<compile_context>
chip_gen: v7x
topology: tpu7x:2x2x1
jax: 0.10.0
libtpu: 0.0.40
codegen_flags: <defaults>
</compile_context>

<pallas_src>
import functools

import jax
import jax.numpy as jnp
from jax import lax
from jax.experimental import pallas as pl
from jax.experimental.pallas import tpu as pltpu


def _round_up(v, m):
    return (v + m - 1) // m * m


def _osa_fused_kernel(N, H, W, K, Cp,
                      x_ref, w1_ref, b1_ref, w3_ref, b2_ref, w2_ref, b3_ref,
                      out_ref,
                      x_scr, res_scr, pad_scr, col_scr):
    """One grid step == one BottleNeck layer; x / res live in VMEM scratch.

    x_ref  : (M, Cp)           channel-padded input rows, M = N*H*W
    w1_ref : (1, Cp, Cp)       1x1 conv (BN scale folded), zero-padded
    w3_ref : (1, K*K*Cp, Cp)   KxK conv, taps stacked along the contraction
    w2_ref : (1, Cp, Cp)       1x1 conv
    b*_ref : (1, 1, Cp)        folded BN biases
    out_ref: (M, Cp)           OSA output (written on the last layer)
    """
    layer = pl.program_id(0)
    pad = K // 2
    M = N * H * W

    @pl.when(layer == 0)
    def _init():
        # Halo of the padded buffer stays zero across all layers; only the
        # interior is overwritten below.
        pad_scr[...] = jnp.zeros_like(pad_scr)
        x_scr[...] = x_ref[...]
        res_scr[...] = x_ref[...]

    x = x_scr[...]                                            # (M, Cp) f32

    # ---- conv1: 1x1 -> folded BN -> ReLU (one MXU matmul) -------------------
    h1 = jnp.dot(x, w1_ref[0], preferred_element_type=jnp.float32)
    h1 = jnp.maximum(h1 + b1_ref[0], 0.0)                     # (M, Cp)

    # ---- conv2: KxK stride-1 SAME -> folded BN -> ReLU, as im2col matmul ----
    pad_scr[:, pad:pad + H, pad:pad + W, :] = h1.reshape(N, H, W, Cp)
    for t in range(K * K):
        dy, dx = t // K, t % K
        col_scr[:, :, :, t * Cp:(t + 1) * Cp] = pad_scr[:, dy:dy + H, dx:dx + W, :]
    patches = col_scr[...].reshape(M, K * K * Cp)             # (M, K*K*Cp)
    h2 = jnp.dot(patches, w3_ref[0], preferred_element_type=jnp.float32)
    h2 = jnp.maximum(h2 + b2_ref[0], 0.0)                     # (M, Cp)

    # ---- conv3: 1x1 -> folded BN -> ReLU ------------------------------------
    h3 = jnp.dot(h2, w2_ref[0], preferred_element_type=jnp.float32)
    h3 = jnp.maximum(h3 + b3_ref[0], 0.0)                     # (M, Cp)

    new_x = x + h3                                            # BottleNeck residual
    x_scr[...] = new_x
    res_scr[...] = res_scr[...] + new_x                       # OSA accumulation

    @pl.when(layer == pl.num_programs(0) - 1)
    def _finalize():
        out_ref[...] = res_scr[...].astype(out_ref.dtype)


def _prepare_packed_params(params, C, Cmid, K, Cp):
    """Fold BN scales into conv weights, zero-pad channels to Cp, stack layers."""
    w1s, b1s, w3s, b2s, w2s, b3s = [], [], [], [], [], []
    for p in params:
        w1 = p["w1"] * p["s1"]                     # (C, Cmid), scale on Cout
        w3 = p["w3"] * p["s2"]                     # (K*K, Cmid, Cmid), scale on Cout
        w2 = p["w2"] * p["s3"]                     # (Cmid, C), scale on Cout
        w1p = jnp.zeros((Cp, Cp), jnp.float32).at[:C, :Cmid].set(w1)
        w3p = (jnp.zeros((K * K, Cp, Cp), jnp.float32)
               .at[:, :Cmid, :Cmid].set(w3)).reshape(K * K * Cp, Cp)
        w2p = jnp.zeros((Cp, Cp), jnp.float32).at[:Cmid, :C].set(w2)
        b1p = jnp.zeros((1, Cp), jnp.float32).at[:, :Cmid].set(p["b1"])
        b2p = jnp.zeros((1, Cp), jnp.float32).at[:, :Cmid].set(p["b2"])
        b3p = jnp.zeros((1, Cp), jnp.float32).at[:, :C].set(p["b3"])
        w1s.append(w1p); w3s.append(w3p); w2s.append(w2p)
        b1s.append(b1p); b2s.append(b2p); b3s.append(b3p)
    stk = lambda xs: jnp.stack(xs, axis=0)
    return stk(w1s), stk(b1s), stk(w3s), stk(b2s), stk(w2s), stk(b3s)


def osa_forward(x_nchw, params, kernel_size):
    """OSAModule.forward (inference / folded BN). x_nchw: (N,C,H,W) -> (N,C,H,W)."""
    N, C, H, W = x_nchw.shape
    K = kernel_size
    Cmid = params[0]["w1"].shape[1]
    L = len(params)
    pad = K // 2
    Cp = _round_up(max(C, Cmid, 128), 128)     # lane-dense channel width
    M = N * H * W

    # NCHW -> NHWC -> (M, Cp) rows; channels zero-padded so the lane axis is dense.
    x_rows = jnp.transpose(x_nchw, (0, 2, 3, 1)).reshape(M, C)
    x_rows = jnp.zeros((M, Cp), x_nchw.dtype).at[:, :C].set(x_rows)

    w1s, b1s, w3s, b2s, w2s, b3s = _prepare_packed_params(params, C, Cmid, K, Cp)

    kern = functools.partial(_osa_fused_kernel, N, H, W, K, Cp)
    out_rows = pl.pallas_call(
        kern,
        out_shape=jax.ShapeDtypeStruct((M, Cp), jnp.float32),
        grid_spec=pltpu.PrefetchScalarGridSpec(
            num_scalar_prefetch=0,
            grid=(L,),                                   # one step per BottleNeck
            in_specs=[
                pl.BlockSpec((M, Cp), lambda l: (0, 0)),                 # x
                pl.BlockSpec((1, Cp, Cp), lambda l: (l, 0, 0)),          # w1
                pl.BlockSpec((1, 1, Cp), lambda l: (l, 0, 0)),           # b1
                pl.BlockSpec((1, K * K * Cp, Cp), lambda l: (l, 0, 0)),  # w3
                pl.BlockSpec((1, 1, Cp), lambda l: (l, 0, 0)),           # b2
                pl.BlockSpec((1, Cp, Cp), lambda l: (l, 0, 0)),          # w2
                pl.BlockSpec((1, 1, Cp), lambda l: (l, 0, 0)),           # b3
            ],
            out_specs=pl.BlockSpec((M, Cp), lambda l: (0, 0)),
            scratch_shapes=[
                pltpu.VMEM((M, Cp), jnp.float32),                        # x carry
                pltpu.VMEM((M, Cp), jnp.float32),                        # res carry
                pltpu.VMEM((N, H + 2 * pad, W + 2 * pad, Cp), jnp.float32),
                pltpu.VMEM((N, H, W, K * K * Cp), jnp.float32),          # im2col
            ],
        ),
        compiler_params=pltpu.CompilerParams(
            # Layer axis is a sequential carry (x/res resident in VMEM scratch).
            dimension_semantics=("arbitrary",),
        ),
    )(x_rows, w1s, b1s, w3s, b2s, w2s, b3s)

    out = out_rows[:, :C].reshape(N, H, W, C)
    return jnp.transpose(out, (0, 3, 1, 2))


def make_osa_params(key, channel, kernel_size, exp, layer_num):
    """Deterministic synthetic parameters (matmul-friendly shapes)."""
    cmid = int(channel * exp)
    params = []
    for i in range(layer_num):
        ks = jax.random.split(jax.random.fold_in(key, i), 9)
        p = {
            # conv weights
            "w1": jax.random.normal(ks[0], (channel, cmid), jnp.float32)
                  / jnp.sqrt(float(channel)),
            "w3": jax.random.normal(ks[1], (kernel_size * kernel_size, cmid, cmid),
                                    jnp.float32)
                  / jnp.sqrt(float(cmid * kernel_size * kernel_size)),
            "w2": jax.random.normal(ks[2], (cmid, channel), jnp.float32)
                  / jnp.sqrt(float(cmid)),
            # folded (eval-mode) BN scale / bias
            "s1": 1.0 + 0.1 * jax.random.normal(ks[3], (1, cmid), jnp.float32),
            "b1": 0.1 * jax.random.normal(ks[4], (1, cmid), jnp.float32),
            "s2": 1.0 + 0.1 * jax.random.normal(ks[5], (1, cmid), jnp.float32),
            "b2": 0.1 * jax.random.normal(ks[6], (1, cmid), jnp.float32),
            "s3": 1.0 + 0.1 * jax.random.normal(ks[7], (1, channel), jnp.float32),
            "b3": 0.1 * jax.random.normal(ks[8], (1, channel), jnp.float32),
        }
        params.append(p)
    return params


def osa_reference(x_nhwc, params, kernel_size):
    """Pure-JAX (XLA) reference of the same forward pass, NHWC."""
    def conv_kxk(h, w3_taps):
        K = kernel_size
        w_hwio = w3_taps.reshape(K, K, w3_taps.shape[1], w3_taps.shape[2])
        return lax.conv_general_dilated(
            h, w_hwio, window_strides=(1, 1), padding="SAME",
            dimension_numbers=("NHWC", "HWIO", "NHWC"),
            precision=lax.Precision.HIGHEST)

    x = x_nhwc
    res = x_nhwc
    for p in params:
        h = jnp.maximum(jnp.einsum("nhwc,cd->nhwd", x, p["w1"],
                                   precision=lax.Precision.HIGHEST)
                        * p["s1"] + p["b1"], 0.0)
        h = jnp.maximum(conv_kxk(h, p["w3"]) * p["s2"] + p["b2"], 0.0)
        h = jnp.maximum(jnp.einsum("nhwc,cd->nhwd", h, p["w2"],
                                   precision=lax.Precision.HIGHEST)
                        * p["s3"] + p["b3"], 0.0)
        x = x + h
        res = res + x
    return res


if __name__ == "__main__":
    # OSAModule(channel=32, kernel=3, exp=0.5, layer_num=2); input NCHW.
    channel, kernel_size, exp, layer_num = 32, 3, 0.5, 2
    N, H, W = 2, 8, 8

    key = jax.random.PRNGKey(0)
    kx, kp = jax.random.split(key)
    x_nchw = jax.random.normal(kx, (N, channel, H, W), jnp.float32)
    params = make_osa_params(kp, channel, kernel_size, exp, layer_num)

    out = osa_forward(x_nchw, params, kernel_size)
    out = jax.block_until_ready(out)
    assert out.shape == x_nchw.shape and out.dtype == jnp.float32

    # Numerical check against a pure-JAX reference.  Tolerance covers the
    # TPU MXU's multi-pass f32 matmul behaviour vs XLA's conv/einsum path.
    ref_nhwc = osa_reference(jnp.transpose(x_nchw, (0, 2, 3, 1)), params, kernel_size)
    ref = jnp.transpose(ref_nhwc, (0, 3, 1, 2))
    max_err = float(jnp.max(jnp.abs(out - ref)))
    assert max_err < 5e-2, f"mismatch vs reference: max abs err = {max_err}"

    print("KERNEL_OK")
</pallas_src>

<mosaic_0001>
module attributes {stable_mosaic.version = 11 : i64} {
  func.func @_osa_fused_kernel(%arg0: i32, %arg1: memref<128x128xf32, #tpu.memory_space<vmem>>, %arg2: memref<1x128x128xf32, #tpu.memory_space<vmem>>, %arg3: memref<1x1x128xf32, #tpu.memory_space<vmem>>, %arg4: memref<1x1152x128xf32, #tpu.memory_space<vmem>>, %arg5: memref<1x1x128xf32, #tpu.memory_space<vmem>>, %arg6: memref<1x128x128xf32, #tpu.memory_space<vmem>>, %arg7: memref<1x1x128xf32, #tpu.memory_space<vmem>>, %arg8: memref<128x128xf32, #tpu.memory_space<vmem>>, %arg9: memref<128x128xf32, #tpu.memory_space<vmem>>, %arg10: memref<128x128xf32, #tpu.memory_space<vmem>>, %arg11: memref<2x10x10x128xf32, #tpu.memory_space<vmem>>, %arg12: memref<2x8x8x1152xf32, #tpu.memory_space<vmem>>) attributes {dimension_semantics = [#tpu.dimension_semantics<arbitrary>], iteration_bounds = array<i64: 2>, scalar_prefetch = 0 : i64, scratch_operands = 4 : i64, tpu.core_type = #tpu.core_type<tc>, window_params = [{pipeline_mode = #tpu.pipeline_mode<synchronous>, transform_indices = @transform_0, window_bounds = array<i64: 128, 128>}, {transform_indices = @transform_1, window_bounds = array<i64: 1, 128, 128>}, {transform_indices = @transform_2, window_bounds = array<i64: 1, 1, 128>}, {transform_indices = @transform_3, window_bounds = array<i64: 1, 1152, 128>}, {transform_indices = @transform_4, window_bounds = array<i64: 1, 1, 128>}, {transform_indices = @transform_5, window_bounds = array<i64: 1, 128, 128>}, {transform_indices = @transform_6, window_bounds = array<i64: 1, 1, 128>}, {pipeline_mode = #tpu.pipeline_mode<synchronous>, transform_indices = @transform_7, window_bounds = array<i64: 128, 128>}]} {
    %c0_i32 = arith.constant 0 : i32
    %0 = arith.cmpi eq, %arg0, %c0_i32 : i32
    %1 = arith.extui %0 : i1 to i32
    %c0_i32_0 = arith.constant 0 : i32
    %2 = arith.cmpi ne, %1, %c0_i32_0 : i32
    scf.if %2 {
      %cst_102 = arith.constant 0.000000e+00 : f32
      %61 = vector.broadcast %cst_102 : f32 to vector<2x10x10x128xf32>
      %c0_103 = arith.constant 0 : index
      %c0_104 = arith.constant 0 : index
      %c0_105 = arith.constant 0 : index
      %c0_106 = arith.constant 0 : index
      %62 = vector.load %arg11[%c0_103, %c0_104, %c0_105, %c0_106] : memref<2x10x10x128xf32, #tpu.memory_space<vmem>>, vector<2x10x10x128xf32>
      tpu.vector_store %arg11[%c0_103, %c0_104, %c0_105, %c0_106], %61 {strides = array<i32>} : memref<2x10x10x128xf32, #tpu.memory_space<vmem>>, vector<2x10x10x128xf32>,
      %c0_107 = arith.constant 0 : index
      %c0_108 = arith.constant 0 : index
      %63 = vector.load %arg1[%c0_107, %c0_108] : memref<128x128xf32, #tpu.memory_space<vmem>>, vector<128x128xf32>
      %c0_109 = arith.constant 0 : index
      %c0_110 = arith.constant 0 : index
      %64 = vector.load %arg9[%c0_109, %c0_110] : memref<128x128xf32, #tpu.memory_space<vmem>>, vector<128x128xf32>
      tpu.vector_store %arg9[%c0_109, %c0_110], %63 {strides = array<i32>} : memref<128x128xf32, #tpu.memory_space<vmem>>, vector<128x128xf32>,
      %c0_111 = arith.constant 0 : index
      %c0_112 = arith.constant 0 : index
      %65 = vector.load %arg1[%c0_111, %c0_112] : memref<128x128xf32, #tpu.memory_space<vmem>>, vector<128x128xf32>
      %c0_113 = arith.constant 0 : index
      %c0_114 = arith.constant 0 : index
      %66 = vector.load %arg10[%c0_113, %c0_114] : memref<128x128xf32, #tpu.memory_space<vmem>>, vector<128x128xf32>
      tpu.vector_store %arg10[%c0_113, %c0_114], %65 {strides = array<i32>} : memref<128x128xf32, #tpu.memory_space<vmem>>, vector<128x128xf32>,
    } else {
    }
    %c0 = arith.constant 0 : index
    %c0_1 = arith.constant 0 : index
    %3 = vector.load %arg9[%c0, %c0_1] : memref<128x128xf32, #tpu.memory_space<vmem>>, vector<128x128xf32>
    %c0_2 = arith.constant 0 : index
    %c0_3 = arith.constant 0 : index
    %c0_4 = arith.constant 0 : index
    %4 = vector.load %arg2[%c0_2, %c0_3, %c0_4] : memref<1x128x128xf32, #tpu.memory_space<vmem>>, vector<1x128x128xf32>
    %5 = vector.shape_cast %4 : vector<1x128x128xf32> to vector<128x128xf32>
    %cst = arith.constant dense<0.000000e+00> : vector<128x128xf32>
    %6 = tpu.matmul %3, %5, %cst {dimension_numbers = #tpu.dot_dimension_numbers<[1], [0], [0], [1], [0, 0, 1, 1], [], []>} : vector<128x128xf32>, vector<128x128xf32>, vector<128x128xf32> -> vector<128x128xf32>
    %c0_5 = arith.constant 0 : index
    %c0_6 = arith.constant 0 : index
    %c0_7 = arith.constant 0 : index
    %7 = vector.load %arg3[%c0_5, %c0_6, %c0_7] : memref<1x1x128xf32, #tpu.memory_space<vmem>>, vector<1x1x128xf32>
    %8 = vector.shape_cast %7 : vector<1x1x128xf32> to vector<1x128xf32>
    %9 = vector.broadcast %8 : vector<1x128xf32> to vector<128x128xf32>
    %10 = arith.addf %6, %9 : vector<128x128xf32>
    %cst_8 = arith.constant 0.000000e+00 : f32
    %11 = vector.broadcast %cst_8 : f32 to vector<128x128xf32>
    %12 = arith.maximumf %10, %11 : vector<128x128xf32>
    %13 = vector.shape_cast %12 : vector<128x128xf32> to vector<2x8x8x128xf32>
    %c0_9 = arith.constant 0 : index
    %c1 = arith.constant 1 : index
    %c1_10 = arith.constant 1 : index
    %c0_11 = arith.constant 0 : index
    %14 = vector.load %arg11[%c0_9, %c1, %c1_10, %c0_11] : memref<2x10x10x128xf32, #tpu.memory_space<vmem>>, vector<2x8x8x128xf32>
    tpu.vector_store %arg11[%c0_9, %c1, %c1_10, %c0_11], %13 {strides = array<i32>} : memref<2x10x10x128xf32, #tpu.memory_space<vmem>>, vector<2x8x8x128xf32>,
    %c0_12 = arith.constant 0 : index
    %c0_13 = arith.constant 0 : index
    %c0_14 = arith.constant 0 : index
    %c0_15 = arith.constant 0 : index
    %15 = vector.load %arg11[%c0_12, %c0_13, %c0_14, %c0_15] : memref<2x10x10x128xf32, #tpu.memory_space<vmem>>, vector<2x8x8x128xf32>
    %c0_16 = arith.constant 0 : index
    %c0_17 = arith.constant 0 : index
    %c0_18 = arith.constant 0 : index
    %c0_19 = arith.constant 0 : index
    %16 = vector.load %arg12[%c0_16, %c0_17, %c0_18, %c0_19] : memref<2x8x8x1152xf32, #tpu.memory_space<vmem>>, vector<2x8x8x128xf32>
    tpu.vector_store %arg12[%c0_16, %c0_17, %c0_18, %c0_19], %15 {strides = array<i32>} : memref<2x8x8x1152xf32, #tpu.memory_space<vmem>>, vector<2x8x8x128xf32>,
    %c0_20 = arith.constant 0 : index
    %c0_21 = arith.constant 0 : index
    %c1_22 = arith.constant 1 : index
    %c0_23 = arith.constant 0 : index
    %17 = vector.load %arg11[%c0_20, %c0_21, %c1_22, %c0_23] : memref<2x10x10x128xf32, #tpu.memory_space<vmem>>, vector<2x8x8x128xf32>
    %c0_24 = arith.constant 0 : index
    %c0_25 = arith.constant 0 : index
    %c0_26 = arith.constant 0 : index
    %c128 = arith.constant 128 : index
    %18 = vector.load %arg12[%c0_24, %c0_25, %c0_26, %c128] : memref<2x8x8x1152xf32, #tpu.memory_space<vmem>>, vector<2x8x8x128xf32>
    tpu.vector_store %arg12[%c0_24, %c0_25, %c0_26, %c128], %17 {strides = array<i32>} : memref<2x8x8x1152xf32, #tpu.memory_space<vmem>>, vector<2x8x8x128xf32>,
    %c0_27 = arith.constant 0 : index
    %c0_28 = arith.constant 0 : index
    %c2 = arith.constant 2 : index
    %c0_29 = arith.constant 0 : index
    %19 = vector.load %arg11[%c0_27, %c0_28, %c2, %c0_29] : memref<2x10x10x128xf32, #tpu.memory_space<vmem>>, vector<2x8x8x128xf32>
    %c0_30 = arith.constant 0 : index
    %c0_31 = arith.constant 0 : index
    %c0_32 = arith.constant 0 : index
    %c256 = arith.constant 256 : index
    %20 = vector.load %arg12[%c0_30, %c0_31, %c0_32, %c256] : memref<2x8x8x1152xf32, #tpu.memory_space<vmem>>, vector<2x8x8x128xf32>
    tpu.vector_store %arg12[%c0_30, %c0_31, %c0_32, %c256], %19 {strides = array<i32>} : memref<2x8x8x1152xf32, #tpu.memory_space<vmem>>, vector<2x8x8x128xf32>,
    %c0_33 = arith.constant 0 : index
    %c1_34 = arith.constant 1 : index
    %c0_35 = arith.constant 0 : index
    %c0_36 = arith.constant 0 : index
    %21 = vector.load %arg11[%c0_33, %c1_34, %c0_35, %c0_36] : memref<2x10x10x128xf32, #tpu.memory_space<vmem>>, vector<2x8x8x128xf32>
    %c0_37 = arith.constant 0 : index
    %c0_38 = arith.constant 0 : index
    %c0_39 = arith.constant 0 : index
    %c384 = arith.constant 384 : index
    %22 = vector.load %arg12[%c0_37, %c0_38, %c0_39, %c384] : memref<2x8x8x1152xf32, #tpu.memory_space<vmem>>, vector<2x8x8x128xf32>
    tpu.vector_store %arg12[%c0_37, %c0_38, %c0_39, %c384], %21 {strides = array<i32>} : memref<2x8x8x1152xf32, #tpu.memory_space<vmem>>, vector<2x8x8x128xf32>,
    %c0_40 = arith.constant 0 : index
    %c1_41 = arith.constant 1 : index
    %c1_42 = arith.constant 1 : index
    %c0_43 = arith.constant 0 : index
    %23 = vector.load %arg11[%c0_40, %c1_41, %c1_42, %c0_43] : memref<2x10x10x128xf32, #tpu.memory_space<vmem>>, vector<2x8x8x128xf32>
    %c0_44 = arith.constant 0 : index
    %c0_45 = arith.constant 0 : index
    %c0_46 = arith.constant 0 : index
    %c512 = arith.constant 512 : index
    %24 = vector.load %arg12[%c0_44, %c0_45, %c0_46, %c512] : memref<2x8x8x1152xf32, #tpu.memory_space<vmem>>, vector<2x8x8x128xf32>
    tpu.vector_store %arg12[%c0_44, %c0_45, %c0_46, %c512], %23 {strides = array<i32>} : memref<2x8x8x1152xf32, #tpu.memory_space<vmem>>, vector<2x8x8x128xf32>,
    %c0_47 = arith.constant 0 : index
    %c1_48 = arith.constant 1 : index
    %c2_49 = arith.constant 2 : index
    %c0_50 = arith.constant 0 : index
    %25 = vector.load %arg11[%c0_47, %c1_48, %c2_49, %c0_50] : memref<2x10x10x128xf32, #tpu.memory_space<vmem>>, vector<2x8x8x128xf32>
    %c0_51 = arith.constant 0 : index
    %c0_52 = arith.constant 0 : index
    %c0_53 = arith.constant 0 : index
    %c640 = arith.constant 640 : index
    %26 = vector.load %arg12[%c0_51, %c0_52, %c0_53, %c640] : memref<2x8x8x1152xf32, #tpu.memory_space<vmem>>, vector<2x8x8x128xf32>
    tpu.vector_store %arg12[%c0_51, %c0_52, %c0_53, %c640], %25 {strides = array<i32>} : memref<2x8x8x1152xf32, #tpu.memory_space<vmem>>, vector<2x8x8x128xf32>,
    %c0_54 = arith.constant 0 : index
    %c2_55 = arith.constant 2 : index
    %c0_56 = arith.constant 0 : index
    %c0_57 = arith.constant 0 : index
    %27 = vector.load %arg11[%c0_54, %c2_55, %c0_56, %c0_57] : memref<2x10x10x128xf32, #tpu.memory_space<vmem>>, vector<2x8x8x128xf32>
    %c0_58 = arith.constant 0 : index
    %c0_59 = arith.constant 0 : index
    %c0_60 = arith.constant 0 : index
    %c768 = arith.constant 768 : index
    %28 = vector.load %arg12[%c0_58, %c0_59, %c0_60, %c768] : memref<2x8x8x1152xf32, #tpu.memory_space<vmem>>, vector<2x8x8x128xf32>
    tpu.vector_store %arg12[%c0_58, %c0_59, %c0_60, %c768], %27 {strides = array<i32>} : memref<2x8x8x1152xf32, #tpu.memory_space<vmem>>, vector<2x8x8x128xf32>,
    %c0_61 = arith.constant 0 : index
    %c2_62 = arith.constant 2 : index
    %c1_63 = arith.constant 1 : index
    %c0_64 = arith.constant 0 : index
    %29 = vector.load %arg11[%c0_61, %c2_62, %c1_63, %c0_64] : memref<2x10x10x128xf32, #tpu.memory_space<vmem>>, vector<2x8x8x128xf32>
    %c0_65 = arith.constant 0 : index
    %c0_66 = arith.constant 0 : index
    %c0_67 = arith.constant 0 : index
    %c896 = arith.constant 896 : index
    %30 = vector.load %arg12[%c0_65, %c0_66, %c0_67, %c896] : memref<2x8x8x1152xf32, #tpu.memory_space<vmem>>, vector<2x8x8x128xf32>
    tpu.vector_store %arg12[%c0_65, %c0_66, %c0_67, %c896], %29 {strides = array<i32>} : memref<2x8x8x1152xf32, #tpu.memory_space<vmem>>, vector<2x8x8x128xf32>,
    %c0_68 = arith.constant 0 : index
    %c2_69 = arith.constant 2 : index
    %c2_70 = arith.constant 2 : index
    %c0_71 = arith.constant 0 : index
    %31 = vector.load %arg11[%c0_68, %c2_69, %c2_70, %c0_71] : memref<2x10x10x128xf32, #tpu.memory_space<vmem>>, vector<2x8x8x128xf32>
    %c0_72 = arith.constant 0 : index
    %c0_73 = arith.constant 0 : index
    %c0_74 = arith.constant 0 : index
    %c1024 = arith.constant 1024 : index
    %32 = vector.load %arg12[%c0_72, %c0_73, %c0_74, %c1024] : memref<2x8x8x1152xf32, #tpu.memory_space<vmem>>, vector<2x8x8x128xf32>
    tpu.vector_store %arg12[%c0_72, %c0_73, %c0_74, %c1024], %31 {strides = array<i32>} : memref<2x8x8x1152xf32, #tpu.memory_space<vmem>>, vector<2x8x8x128xf32>,
    %c0_75 = arith.constant 0 : index
    %c0_76 = arith.constant 0 : index
    %c0_77 = arith.constant 0 : index
    %c0_78 = arith.constant 0 : index
    %33 = vector.load %arg12[%c0_75, %c0_76, %c0_77, %c0_78] : memref<2x8x8x1152xf32, #tpu.memory_space<vmem>>, vector<2x8x8x1152xf32>
    %34 = vector.shape_cast %33 : vector<2x8x8x1152xf32> to vector<128x1152xf32>
    %c0_79 = arith.constant 0 : index
    %c0_80 = arith.constant 0 : index
    %c0_81 = arith.constant 0 : index
    %35 = vector.load %arg4[%c0_79, %c0_80, %c0_81] : memref<1x1152x128xf32, #tpu.memory_space<vmem>>, vector<1x1152x128xf32>
    %36 = vector.shape_cast %35 : vector<1x1152x128xf32> to vector<1152x128xf32>
    %cst_82 = arith.constant dense<0.000000e+00> : vector<128x128xf32>
    %37 = tpu.matmul %34, %36, %cst_82 {dimension_numbers = #tpu.dot_dimension_numbers<[1], [0], [0], [1], [0, 0, 1, 1], [], []>} : vector<128x1152xf32>, vector<1152x128xf32>, vector<128x128xf32> -> vector<128x128xf32>
    %c0_83 = arith.constant 0 : index
    %c0_84 = arith.constant 0 : index
    %c0_85 = arith.constant 0 : index
    %38 = vector.load %arg5[%c0_83, %c0_84, %c0_85] : memref<1x1x128xf32, #tpu.memory_space<vmem>>, vector<1x1x128xf32>
    %39 = vector.shape_cast %38 : vector<1x1x128xf32> to vector<1x128xf32>
    %40 = vector.broadcast %39 : vector<1x128xf32> to vector<128x128xf32>
    %41 = arith.addf %37, %40 : vector<128x128xf32>
    %cst_86 = arith.constant 0.000000e+00 : f32
    %42 = vector.broadcast %cst_86 : f32 to vector<128x128xf32>
    %43 = arith.maximumf %41, %42 : vector<128x128xf32>
    %c0_87 = arith.constant 0 : index
    %c0_88 = arith.constant 0 : index
    %c0_89 = arith.constant 0 : index
    %44 = vector.load %arg6[%c0_87, %c0_88, %c0_89] : memref<1x128x128xf32, #tpu.memory_space<vmem>>, vector<1x128x128xf32>
    %45 = vector.shape_cast %44 : vector<1x128x128xf32> to vector<128x128xf32>
    %cst_90 = arith.constant dense<0.000000e+00> : vector<128x128xf32>
    %46 = tpu.matmul %43, %45, %cst_90 {dimension_numbers = #tpu.dot_dimension_numbers<[1], [0], [0], [1], [0, 0, 1, 1], [], []>} : vector<128x128xf32>, vector<128x128xf32>, vector<128x128xf32> -> vector<128x128xf32>
    %c0_91 = arith.constant 0 : index
    %c0_92 = arith.constant 0 : index
    %c0_93 = arith.constant 0 : index
    %47 = vector.load %arg7[%c0_91, %c0_92, %c0_93] : memref<1x1x128xf32, #tpu.memory_space<vmem>>, vector<1x1x128xf32>
    %48 = vector.shape_cast %47 : vector<1x1x128xf32> to vector<1x128xf32>
    %49 = vector.broadcast %48 : vector<1x128xf32> to vector<128x128xf32>
    %50 = arith.addf %46, %49 : vector<128x128xf32>
    %cst_94 = arith.constant 0.000000e+00 : f32
    %51 = vector.broadcast %cst_94 : f32 to vector<128x128xf32>
    %52 = arith.maximumf %50, %51 : vector<128x128xf32>
    %53 = arith.addf %3, %52 : vector<128x128xf32>
    %c0_95 = arith.constant 0 : index
    %c0_96 = arith.constant 0 : index
    %54 = vector.load %arg9[%c0_95, %c0_96] : memref<128x128xf32, #tpu.memory_space<vmem>>, vector<128x128xf32>
    tpu.vector_store %arg9[%c0_95, %c0_96], %53 {strides = array<i32>} : memref<128x128xf32, #tpu.memory_space<vmem>>, vector<128x128xf32>,
    %c0_97 = arith.constant 0 : index
    %c0_98 = arith.constant 0 : index
    %55 = vector.load %arg10[%c0_97, %c0_98] : memref<128x128xf32, #tpu.memory_space<vmem>>, vector<128x128xf32>
    %56 = arith.addf %55, %53 : vector<128x128xf32>
    %c0_99 = arith.constant 0 : index
    %c0_100 = arith.constant 0 : index
    %57 = vector.load %arg10[%c0_99, %c0_100] : memref<128x128xf32, #tpu.memory_space<vmem>>, vector<128x128xf32>
    tpu.vector_store %arg10[%c0_99, %c0_100], %56 {strides = array<i32>} : memref<128x128xf32, #tpu.memory_space<vmem>>, vector<128x128xf32>,
    %c1_i32 = arith.constant 1 : i32
    %58 = arith.cmpi eq, %arg0, %c1_i32 : i32
    %59 = arith.extui %58 : i1 to i32
    %c0_i32_101 = arith.constant 0 : i32
    %60 = arith.cmpi ne, %59, %c0_i32_101 : i32
    scf.if %60 {
      %c0_102 = arith.constant 0 : index
      %c0_103 = arith.constant 0 : index
      %61 = vector.load %arg10[%c0_102, %c0_103] : memref<128x128xf32, #tpu.memory_space<vmem>>, vector<128x128xf32>
      %c0_104 = arith.constant 0 : index
      %c0_105 = arith.constant 0 : index
      %62 = vector.load %arg8[%c0_104, %c0_105] : memref<128x128xf32, #tpu.memory_space<vmem>>, vector<128x128xf32>
      tpu.vector_store %arg8[%c0_104, %c0_105], %61 {strides = array<i32>} : memref<128x128xf32, #tpu.memory_space<vmem>>, vector<128x128xf32>,
    } else {
    }
    return
  }
  func.func @transform_0(%arg0: i32) -> (i32, i32) {
    %c0_i32 = arith.constant 0 : i32
    %c0_i32_0 = arith.constant 0 : i32
    %c0_i32_1 = arith.constant 0 : i32
    return %c0_i32, %c0_i32_0 : i32, i32
  }
  func.func @transform_1(%arg0: i32) -> (i32, i32, i32) {
    %c0_i32 = arith.constant 0 : i32
    %c0_i32_0 = arith.constant 0 : i32
    %c0_i32_1 = arith.constant 0 : i32
    return %arg0, %c0_i32, %c0_i32_0 : i32, i32, i32
  }
  func.func @transform_2(%arg0: i32) -> (i32, i32, i32) {
    %c0_i32 = arith.constant 0 : i32
    %c0_i32_0 = arith.constant 0 : i32
    %c0_i32_1 = arith.constant 0 : i32
    return %arg0, %c0_i32, %c0_i32_0 : i32, i32, i32
  }
  func.func @transform_3(%arg0: i32) -> (i32, i32, i32) {
    %c0_i32 = arith.constant 0 : i32
    %c0_i32_0 = arith.constant 0 : i32
    %c0_i32_1 = arith.constant 0 : i32
    return %arg0, %c0_i32, %c0_i32_0 : i32, i32, i32
  }
  func.func @transform_4(%arg0: i32) -> (i32, i32, i32) {
    %c0_i32 = arith.constant 0 : i32
    %c0_i32_0 = arith.constant 0 : i32
    %c0_i32_1 = arith.constant 0 : i32
    return %arg0, %c0_i32, %c0_i32_0 : i32, i32, i32
  }
  func.func @transform_5(%arg0: i32) -> (i32, i32, i32) {
    %c0_i32 = arith.constant 0 : i32
    %c0_i32_0 = arith.constant 0 : i32
    %c0_i32_1 = arith.constant 0 : i32
    return %arg0, %c0_i32, %c0_i32_0 : i32, i32, i32
  }
  func.func @transform_6(%arg0: i32) -> (i32, i32, i32) {
    %c0_i32 = arith.constant 0 : i32
    %c0_i32_0 = arith.constant 0 : i32
    %c0_i32_1 = arith.constant 0 : i32
    return %arg0, %c0_i32, %c0_i32_0 : i32, i32, i32
  }
  func.func @transform_7(%arg0: i32) -> (i32, i32) {
    %c0_i32 = arith.constant 0 : i32
    %c0_i32_0 = arith.constant 0 : i32
    %c0_i32_1 = arith.constant 0 : i32
    return %c0_i32, %c0_i32_0 : i32, i32
  }
}

</mosaic_0001>

<bundles_post_ra>
// kernel: tpu_custom_call.1
= control target key start
LH: loop header
LB: loop body
LE: loop exit
PB: predicated region body
PF: predicated region fallthrough
CT: control target
= control target key end

     0   :  { %s4818_s0 = inlined_call_operand.hbm [shape: f32[128,128], index: 0, kind: input, shape index: {}]   ;;  %s4819_s1 = inlined_call_operand.hbm [shape: f32[2,128,128], index: 1, kind: input, shape index: {}]   ;;  %s4820_s2 = inlined_call_operand.hbm [shape: f32[2,1,128], index: 2, kind: input, shape index: {}]   ;;  %s4821_s3 = inlined_call_operand.hbm [shape: f32[2,1152,128], index: 3, kind: input, shape index: {}]   ;;  %s4822_s4 = inlined_call_operand.hbm [shape: f32[2,1,128], index: 4, kind: input, shape index: {}]   ;;  %s4823_s5 = inlined_call_operand.hbm [shape: f32[2,128,128], index: 5, kind: input, shape index: {}]   ;;  %s4824_s6 = inlined_call_operand.hbm [shape: f32[2,1,128], index: 6, kind: input, shape index: {}]   ;;  %s4825_s7 = inlined_call_operand.hbm [shape: f32[128,128], index: 7, kind: output, shape index: {}]  }
   0x1   :  { %4841 = sst [smem:[#allocation24_spill]] %s4819_s1 }
   0x2   :  { %4842 = sst [smem:[#allocation25_spill]] %s4821_s3 }
   0x3   :  { %12 = vsyncpa [#allocation7], 0 }
   0x4   :  { %13 = vsyncpa [#allocation10], 0 }
   0x5   :  { %15 = vsyncpa [#allocation10 + $0x1], 0 }
   0x6   :  { %16 = vsyncpa [#allocation13], 0 }
   0x7   :  { %18 = vsyncpa [#allocation13 + $0x1], 0 }
   0x8   :  { %19 = vsyncpa [#allocation16], 0 }
   0x9   :  { %21 = vsyncpa [#allocation16 + $0x1], 0 }
   0xa   :  { %22 = vsyncpa [#allocation8], 0  ;;  %s3889_s24 = smov 0   ;;  %s3891_s25 = smov 0  }
   0xb   :  { %s3893_s26 = smov 0   ;;  %s3895_s27 = smov 0  }
   0xc LB: > { %s3910_s28 = sadd.s32 1, %s3834_s27   ;;  %s56_s29 = sadd.s32 1, %s3830_s26  ;;  %s3834_s27 = sphi %s3895_s27, %s4870_s27   ;;  %s3830_s26 = sphi %s3893_s26, %s4869_s26   ;;  %s3826_s25 = sphi %s3891_s25, %s4868_s25   ;;  %s3822_s24 = sphi %s3889_s24, %s4867_s24  }
   0xd   : > { %s53_s30 = ssub.s32 %s3834_s27, %s3910_s28  ;;  %p63_p0 = scmp.ne.s32.totalorder %s3830_s26, %s3826_s25 }
   0xe   : > { %p54_p1 = scmp.eq.s32.totalorder %s53_s30, 0  ;;  %p64_p2 = scmp.eq.s32.totalorder %s3834_s27, 0 }
   0xf   : > { %p3491_p4 = scmp.lt.s32.totalorder %s3834_s27, 2  ;;  %s3923_s9 = sand.u32 1, %s3834_s27  }
  0x10   : > { %s3919_s8 = scalar_select %p54_p1, %s3830_s26, %s56_s29  }
  0x11   : > { %p65_p3 = por %p64_p2, %p63_p0  ;;  %s3926_s10 = sand.u32 1, %s3830_s26  }
  0x12   : > { %s4826_s11 = sshll.u32 %s3926_s10, 7  ;;  %s4827_s12 = sshll.u32 %s3834_s27, 11 }
  0x13   : > { %s4843_s1 = sld [smem:[#allocation24_spill]]  ;;  %s261_s16 = scalar_lea.vmem [#allocation9], %s4826_s11 }
  0x14   : > { %s268_s17 = sshll.u32 %s261_s16, 4  ;;  %p3939_p5 = pnand %p3491_p4, %p65_p3  ;;  %s3943_s17 = int_to_ptr.vmem [resolvable:$true] %s268_s17 }
  0x15   : > { %s3444_s19 = smul.u32 1152, %s3926_s10  ;;  %s4828_s20 = scalar_lea.sflag [#allocation10], %s3923_s9 }
  0x16   : > { %s4844_s18 = scalar_select %p3939_p5, 1, 0 }
  0x17   : > { %p3951_p7 = pneg %p3939_p5 }
  0x19   : > { %s3935_s15 = scalar_lea.hbm %s4843_s1, %s4827_s12  ;;  %s3555_s30 = scalar_lea.hbm %s4843_s1, 4096 }
  0x1a   : > { %s3550_s21 = scalar_lea.hbm %s3935_s15, 2048  ;;  %p3556_p10 = scmp.lt.u32.totalorder %s3935_s15, %s4843_s1 }
  0x1b   : > { %p3551_p6 = scmp.ne.s32.totalorder %s3935_s15, %s3550_s21  ;;  %p3557_p11 = scmp.lt.u32.totalorder %s3555_s30, %s3550_s21 }
  0x1c   : > { %s4845_s22 = scalar_select %p3951_p7, 1, 0 }
  0x1d   : > { %p3553_p8 = pnand %p3951_p7, %p3551_p6  ;;  %p3558_p12 = por %p3557_p11, %p3556_p10 }
  0x1e   : > { %p3559_p13 = scmp.lt.u32.totalorder %s3550_s21, %s3935_s15 }
  0x1f   : > { %p3554_p9 = pneg %p3553_p8 }
  0x20   : > { %p3560_p0 = por %p3559_p13, %p3558_p12 }
  0x22   : > { %p3561_p1 = pnand %p3560_p0, %p3554_p9 }
  0x24   : > { %3564 = shalt.err (!%p3561_p1)
}
  0x25   : > { %s3565_s16 = scalar_lea.vmem %s3943_s17, 2048  ;;  %s3836_s23 = smov [#allocation9]  }
  0x26   : > { %p3566_p2 = scmp.ne.s32.totalorder %s3943_s17, %s3565_s16  ;;  %s3570_s29 = sshll.u32 %s3836_s23, 4  ;;  %s3571_s29 = int_to_ptr.vmem [resolvable:$false] %s3570_s29 }
  0x27   : > { %s3572_s13 = scalar_lea.vmem %s3571_s29, 4096  ;;  %p3573_p6 = scmp.lt.s32.totalorder %s3943_s17, %s3571_s29 }
  0x28   : > { %p3568_p3 = pnand %p3566_p2, %p3951_p7  ;;  %p3574_p8 = scmp.lt.s32.totalorder %s3572_s13, %s3565_s16 }
  0x2a   : > { %p3569_p4 = pneg %p3568_p3  ;;  %p3575_p10 = por %p3574_p8, %p3573_p6 }
  0x2c   : > { %p3576_p11 = pnand %p3575_p10, %p3569_p4 }
  0x2e   : > { %3579 = shalt.err (!%p3576_p11)
}
  0x2f   : > { %s4831_s21 = smov 128   ;;  %s4834_s30 = smov 8  }
  0x30   : > { %3474 = dma.hbm_to_vmem [thread:$0]  (!%p3939_p5), %s3935_s15, 2048, %s3943_s17, %s4828_s20, %s4831_s21, %s4831_s21, %s4834_s30  }
  0x31   : > { %s3445_s14 = smul.u32 18432, %s3834_s27  ;;  %s299_s16 = scalar_lea.vmem [#allocation12], %s3444_s19 }
  0x32   : > { %s306_s23 = sshll.u32 %s299_s16, 4  ;;  %s4846_s3 = sld [smem:[#allocation25_spill]]  ;;  %s3987_s23 = int_to_ptr.vmem [resolvable:$true] %s306_s23 }
  0x33   : > { %s4830_s12 = scalar_lea.sflag [#allocation13], %s3923_s9 }
  0x38   : > { %s3985_s11 = scalar_lea.hbm %s4846_s3, %s3445_s14  ;;  %s3585_s19 = scalar_lea.hbm %s4846_s3, 36864 }
  0x39   : > { %s3580_s1 = scalar_lea.hbm %s3985_s11, 18432  ;;  %p3586_p0 = scmp.lt.u32.totalorder %s3985_s11, %s4846_s3 }
  0x3a   : > { %p3581_p9 = scmp.ne.s32.totalorder %s3985_s11, %s3580_s1  ;;  %p3587_p1 = scmp.lt.u32.totalorder %s3585_s19, %s3580_s1 }
  0x3b   : > { %p3589_p3 = scmp.lt.u32.totalorder %s3580_s1, %s3985_s11 }
  0x3c   : > { %p3583_p12 = pnand %p3581_p9, %p3951_p7  ;;  %p3588_p2 = por %p3587_p1, %p3586_p0 }
  0x3e   : > { %p3584_p13 = pneg %p3583_p12  ;;  %p3590_p4 = por %p3589_p3, %p3588_p2 }
  0x40   : > { %p3591_p6 = pnand %p3590_p4, %p3584_p13 }
  0x42   : > { %3594 = shalt.err (!%p3591_p6)
}
  0x43   : > { %s3595_s14 = scalar_lea.vmem %s3987_s23, 18432  ;;  %s3839_s13 = smov [#allocation12]  }
  0x44   : > { %p3596_p8 = scmp.ne.s32.totalorder %s3987_s23, %s3595_s14  ;;  %s3600_s15 = sshll.u32 %s3839_s13, 4  ;;  %s3601_s15 = int_to_ptr.vmem [resolvable:$false] %s3600_s15 }
  0x45   : > { %s3602_s17 = scalar_lea.vmem %s3601_s15, 36864  ;;  %p3603_p9 = scmp.lt.s32.totalorder %s3987_s23, %s3601_s15 }
  0x46   : > { %p3598_p10 = pnand %p3596_p8, %p3951_p7  ;;  %p3604_p12 = scmp.lt.s32.totalorder %s3602_s17, %s3595_s14 }
  0x48   : > { %p3599_p11 = pneg %p3598_p10  ;;  %p3605_p0 = por %p3604_p12, %p3603_p9 }
  0x4a   : > { %p3606_p1 = pnand %p3605_p0, %p3599_p11 }
  0x4c   : > { %3609 = shalt.err (!%p3606_p1)
}
  0x4d   : > { %3480 = dma.hbm_to_vmem [thread:$0]  (!%p3939_p5), %s3985_s11, 18432, %s3987_s23, %s4830_s12, %s4831_s21, %s4831_s21, %s4834_s30  }
  0x4e   : > { %s4847_s1 = sshll.u32 %s3834_s27, 11  ;;  %s4848_s14 = sshll.u32 %s3926_s10, 7 }
  0x4f   : > { %s4021_s29 = scalar_lea.hbm %s4823_s5, %s4847_s1  ;;  %s337_s13 = scalar_lea.vmem [#allocation15], %s4848_s14 }
  0x50   : > { %s344_s15 = sshll.u32 %s337_s13, 4  ;;  %s4829_s17 = scalar_lea.sflag [#allocation16], %s3923_s9  ;;  %s4025_s15 = int_to_ptr.vmem [resolvable:$true] %s344_s15 }
  0x51   : > { %s3610_s20 = scalar_lea.hbm %s4021_s29, 2048  ;;  %s3615_s1 = scalar_lea.hbm %s4823_s5, 4096 }
  0x52   : > { %p3611_p13 = scmp.ne.s32.totalorder %s4021_s29, %s3610_s20  ;;  %p3616_p4 = scmp.lt.u32.totalorder %s4021_s29, %s4823_s5 }
  0x53   : > { %p3617_p6 = scmp.lt.u32.totalorder %s3615_s1, %s3610_s20  ;;  %p3619_p10 = scmp.lt.u32.totalorder %s3610_s20, %s4021_s29 }
  0x54   : > { %p3613_p2 = pnand %p3611_p13, %p3951_p7 }
  0x55   : > { %p3618_p8 = por %p3617_p6, %p3616_p4 }
  0x56   : > { %p3614_p3 = pneg %p3613_p2 }
  0x57   : > { %p3620_p11 = por %p3619_p10, %p3618_p8 }
  0x59   : > { %p3621_p9 = pnand %p3620_p11, %p3614_p3 }
  0x5b   : > { %3624 = shalt.err (!%p3621_p9)
}
  0x5c   : > { %s3625_s14 = scalar_lea.vmem %s4025_s15, 2048  ;;  %s3840_s13 = smov [#allocation15]  }
  0x5d   : > { %p3626_p12 = scmp.ne.s32.totalorder %s4025_s15, %s3625_s14  ;;  %s3630_s11 = sshll.u32 %s3840_s13, 4  ;;  %s3631_s11 = int_to_ptr.vmem [resolvable:$false] %s3630_s11 }
  0x5e   : > { %s3632_s23 = scalar_lea.vmem %s3631_s11, 4096  ;;  %p3633_p13 = scmp.lt.s32.totalorder %s4025_s15, %s3631_s11 }
  0x5f   : > { %p3628_p0 = pnand %p3626_p12, %p3951_p7  ;;  %p3634_p2 = scmp.lt.s32.totalorder %s3632_s23, %s3625_s14 }
  0x61   : > { %p3629_p1 = pneg %p3628_p0  ;;  %p3635_p4 = por %p3634_p2, %p3633_p13 }
  0x63   : > { %p3636_p6 = pnand %p3635_p4, %p3629_p1 }
  0x65   : > { %3639 = shalt.err (!%p3636_p6)
}
  0x66   : > { %3486 = dma.hbm_to_vmem [thread:$0]  (!%p3939_p5), %s4021_s29, 2048, %s4025_s15, %s4829_s17, %s4831_s21, %s4831_s21, %s4834_s30  }
  0x67   : > { %s4055_s20 = sadd.s32 4294967295, %s3834_s27   ;;  %p69_p3 = scmp.ne.s32.totalorder %s3826_s25, %s3822_s24 }
  0x68   : > { %p4832_p8 = scmp.eq.s32.totalorder %s4055_s20, 0  ;;  %p2592_p10 = scmp.ge.s32.totalorder %s3834_s27, 1 }
  0x69   : > { %p231_p11 = scmp.lt.s32.totalorder %s3834_s27, 3  ;;  %s3841_s29 = smov [#allocation6]  }
  0x6a   : > { %p4065_p12 = por %p4832_p8, %p69_p3  ;;  %s243_s15 = sshll.u32 %s3841_s29, 4  ;;  %s4073_s15 = int_to_ptr.vmem [resolvable:$true] %s243_s15 }
  0x6b   : > { %p4069_p0 = pnand %p2592_p10, %p231_p11  ;;  %s4078_s24 = sshll.u32 %s3834_s27, 4 }
  0x6c   : > { %s4849_s1 = scalar_select %p4065_p12, 1, 0 }
  0x6d   : > { %s4850_s19 = scalar_select %p4069_p0, 1, 0 }
  0x6e   : > { %p3467_p1 = pneg %p4069_p0  ;;  %s4084_s13 = scalar_lea.hbm %s4820_s2, %s4078_s24 }
  0x6f   : > { %s281_s11 = scalar_lea.vmem [#allocation11], %s3926_s10  ;;  %s3640_s27 = scalar_lea.hbm %s4084_s13, 16 }
  0x70   : > { %s288_s23 = sshll.u32 %s281_s11, 4  ;;  %p4089_p13 = pnand %p3467_p1, %p4832_p8  ;;  %s289_s23 = int_to_ptr.vmem [resolvable:$true] %s288_s23 }
  0x71   : > { %p3641_p2 = scmp.ne.s32.totalorder %s4084_s13, %s3640_s27  ;;  %s3645_s17 = scalar_lea.hbm %s4820_s2, 32 }
  0x72   : > { %s4851_s29 = scalar_select %p4089_p13, 1, 0 }
  0x73   : > { %p3643_p4 = pnand %p3641_p2, %p3951_p7  ;;  %p3646_p3 = scmp.lt.u32.totalorder %s4084_s13, %s4820_s2 }
  0x74   : > { %p3647_p10 = scmp.lt.u32.totalorder %s3645_s17, %s3640_s27  ;;  %p3649_p1 = scmp.lt.u32.totalorder %s3640_s27, %s4084_s13 }
  0x75   : > { %p3644_p6 = pneg %p3643_p4 }
  0x76   : > { %p3648_p11 = por %p3647_p10, %p3646_p3 }
  0x78   : > { %p3650_p9 = por %p3649_p1, %p3648_p11 }
  0x7a   : > { %p3651_p8 = pnand %p3650_p9, %p3644_p6 }
  0x7c   : > { %3654 = shalt.err (!%p3651_p8)
}
  0x7d   : > { %s3655_s11 = scalar_lea.vmem %s289_s23, 16  ;;  %s3842_s30 = smov [#allocation11]  }
  0x7e   : > { %p3656_p12 = scmp.ne.s32.totalorder %s289_s23, %s3655_s11  ;;  %s3660_s3 = sshll.u32 %s3842_s30, 4  ;;  %s3661_s3 = int_to_ptr.vmem [resolvable:$false] %s3660_s3 }
  0x7f   : > { %s3662_s16 = scalar_lea.vmem %s3661_s3, 32  ;;  %p3663_p0 = scmp.lt.s32.totalorder %s289_s23, %s3661_s3 }
  0x80   : > { %p3658_p2 = pnand %p3656_p12, %p3951_p7  ;;  %p3664_p13 = scmp.lt.s32.totalorder %s3662_s16, %s3655_s11 }
  0x82   : > { %p3659_p4 = pneg %p3658_p2  ;;  %p3665_p5 = por %p3664_p13, %p3663_p0 }
  0x84   : > { %p3666_p3 = pnand %p3665_p5, %p3659_p4 }
  0x86   : > { %3669 = shalt.err (!%p3666_p3)
}
  0x87   : > { %p4852_p10 = scmp.ne.s32.totalorder %s4844_s18, 0  ;;  %s4853_s12 = scalar_lea.sflag [#allocation10], %s3923_s9 }
  0x88   : > { %s3670_s27 = scalar_lea.hbm %s4818_s0, 2048  ;;  %p4854_p9 = scmp.ne.s32.totalorder %s4851_s29, 0 }
  0x89   : > { %3477 = dma.hbm_to_vmem [thread:$0]  (!%p4852_p10), %s4084_s13, 16, %s289_s23, %s4853_s12  }
  0x8a   : > { %p3671_p8 = scmp.ne.s32.totalorder %s4818_s0, %s3670_s27  ;;  %p3672_p12 = pneg %p4854_p9 }
  0x8b   : > { %p3677_p13 = scmp.lt.u32.totalorder %s3670_s27, %s4818_s0 }
  0x8c   : > { %p3673_p0 = pnand %p3672_p12, %p3671_p8 }
  0x8e   : > { %p3674_p5 = pneg %p3673_p0 }
  0x90   : > { %p3679_p6 = pnand %p3677_p13, %p3674_p5 }
  0x92   : > { %3682 = shalt.err (!%p3679_p6)
}
  0x93   : > { %s3683_s13 = scalar_lea.vmem %s4073_s15, 2048  ;;  %p3691_p4 = scmp.lt.s32.totalorder %s4073_s15, %s4073_s15 }
  0x94   : > { %p3684_p11 = scmp.ne.s32.totalorder %s4073_s15, %s3683_s13  ;;  %p3692_p3 = scmp.lt.s32.totalorder %s3683_s13, %s3683_s13 }
  0x96   : > { %p3686_p1 = pnand %p3684_p11, %p3672_p12  ;;  %p3693_p10 = por %p3692_p3, %p3691_p4 }
  0x98   : > { %p3687_p2 = pneg %p3686_p1 }
  0x9a   : > { %p3694_p7 = pnand %p3693_p10, %p3687_p2 }
  0x9c   : > { %3697 = shalt.err (!%p3694_p7)
}
  0x9d   : > { %s4855_s23 = smov 8   ;;  %s4856_s16 = smov 128  }
  0x9e   : > { %3470 = dma.hbm_to_vmem [thread:$0]  (!%p4854_p9), %s4818_s0, 2048, %s4073_s15, [#allocation7], %s4856_s16, %s4856_s16, %s4855_s23  }
  0x9f   : > { %s4140_s14 = scalar_lea.hbm %s4822_s4, %s4078_s24  ;;  %s319_s29 = scalar_lea.vmem [#allocation14], %s3926_s10 }
  0xa0   : > { %s326_s30 = sshll.u32 %s319_s29, 4  ;;  %s3698_s3 = scalar_lea.hbm %s4140_s14, 16  ;;  %s327_s30 = int_to_ptr.vmem [resolvable:$true] %s326_s30 }
  0xa1   : > { %p3699_p7 = scmp.ne.s32.totalorder %s4140_s14, %s3698_s3  ;;  %p4857_p10 = scmp.ne.s32.totalorder %s4845_s22, 0 }
  0xa2   : > { %s3703_s15 = scalar_lea.hbm %s4822_s4, 32  ;;  %p3704_p9 = scmp.lt.u32.totalorder %s4140_s14, %s4822_s4 }
  0xa3   : > { %p3701_p8 = pnand %p3699_p7, %p4857_p10  ;;  %p3705_p0 = scmp.lt.u32.totalorder %s3703_s15, %s3698_s3 }
  0xa4   : > { %p3707_p13 = scmp.lt.u32.totalorder %s3698_s3, %s4140_s14 }
  0xa5   : > { %p3702_p12 = pneg %p3701_p8  ;;  %p3706_p5 = por %p3705_p0, %p3704_p9 }
  0xa7   : > { %p3708_p6 = por %p3707_p13, %p3706_p5 }
  0xa9   : > { %p3709_p11 = pnand %p3708_p6, %p3702_p12 }
  0xab   : > { %3712 = shalt.err (!%p3709_p11)
}
  0xac   : > { %s3713_s12 = scalar_lea.vmem %s327_s30, 16  ;;  %s3843_s21 = smov [#allocation14]  }
  0xad   : > { %p3714_p1 = scmp.ne.s32.totalorder %s327_s30, %s3713_s12  ;;  %s3718_s17 = sshll.u32 %s3843_s21, 4  ;;  %s3719_s17 = int_to_ptr.vmem [resolvable:$false] %s3718_s17 }
  0xae   : > { %s3720_s27 = scalar_lea.vmem %s3719_s17, 32  ;;  %p3721_p3 = scmp.lt.s32.totalorder %s327_s30, %s3719_s17 }
  0xaf   : > { %p3716_p2 = pnand %p3714_p1, %p4857_p10  ;;  %p3722_p7 = scmp.lt.s32.totalorder %s3720_s27, %s3713_s12 }
  0xb1   : > { %p3717_p4 = pneg %p3716_p2  ;;  %p3723_p8 = por %p3722_p7, %p3721_p3 }
  0xb3   : > { %p3724_p0 = pnand %p3723_p8, %p3717_p4 }
  0xb5   : > { %3727 = shalt.err (!%p3724_p0)
}
  0xb6   : > { %p4858_p9 = scmp.ne.s32.totalorder %s4844_s18, 0  ;;  %s4859_s29 = scalar_lea.sflag [#allocation13], %s3923_s9 }
  0xb7   : > { %s4166_s13 = scalar_lea.hbm %s4824_s6, %s4078_s24  ;;  %s357_s15 = scalar_lea.vmem [#allocation17], %s3926_s10 }
  0xb8   : > { %3483 = dma.hbm_to_vmem [thread:$0]  (!%p4858_p9), %s4140_s14, 16, %s327_s30, %s4859_s29  }
  0xb9   : > { %s364_s23 = sshll.u32 %s357_s15, 4  ;;  %s3728_s16 = scalar_lea.hbm %s4166_s13, 16  ;;  %s365_s23 = int_to_ptr.vmem [resolvable:$true] %s364_s23 }
  0xba   : > { %p3729_p12 = scmp.ne.s32.totalorder %s4166_s13, %s3728_s16  ;;  %s3733_s14 = scalar_lea.hbm %s4824_s6, 32 }
  0xbb   : > { %p3734_p6 = scmp.lt.u32.totalorder %s4166_s13, %s4824_s6  ;;  %p3735_p11 = scmp.lt.u32.totalorder %s3733_s14, %s3728_s16 }
  0xbc   : > { %p3731_p5 = pnand %p3729_p12, %p4857_p10  ;;  %p3737_p2 = scmp.lt.u32.totalorder %s3728_s16, %s4166_s13 }
  0xbd   : > { %p3736_p1 = por %p3735_p11, %p3734_p6 }
  0xbe   : > { %p3732_p13 = pneg %p3731_p5 }
  0xbf   : > { %p3738_p4 = por %p3737_p2, %p3736_p1 }
  0xc1   : > { %p3739_p3 = pnand %p3738_p4, %p3732_p13 }
  0xc3   : > { %3742 = shalt.err (!%p3739_p3)
}
  0xc4   : > { %s3743_s10 = scalar_lea.vmem %s365_s23, 16  ;;  %s3844_s24 = smov [#allocation17]  }
  0xc5   : > { %p3744_p7 = scmp.ne.s32.totalorder %s365_s23, %s3743_s10  ;;  %s3748_s27 = sshll.u32 %s3844_s24, 4  ;;  %s3749_s27 = int_to_ptr.vmem [resolvable:$false] %s3748_s27 }
  0xc6   : > { %s3750_s29 = scalar_lea.vmem %s3749_s27, 32  ;;  %p3751_p12 = scmp.lt.s32.totalorder %s365_s23, %s3749_s27 }
  0xc7   : > { %p3746_p8 = pnand %p3744_p7, %p4857_p10  ;;  %p3752_p5 = scmp.lt.s32.totalorder %s3750_s29, %s3743_s10 }
  0xc9   : > { %p3747_p0 = pneg %p3746_p8  ;;  %p3753_p9 = por %p3752_p5, %p3751_p12 }
  0xcb   : > { %p3754_p6 = pnand %p3753_p9, %p3747_p0 }
  0xcd   : > { %3757 = shalt.err (!%p3754_p6)
}
  0xce   : > { %p4860_p11 = scmp.ne.s32.totalorder %s4844_s18, 0  ;;  %s4861_s3 = scalar_lea.sflag [#allocation16], %s3923_s9 }
  0xcf   : > { %p4862_p13 = scmp.ne.s32.totalorder %s4850_s19, 0 }
  0xd0   : > { %3489 = dma.hbm_to_vmem [thread:$0]  (!%p4860_p11), %s4166_s13, 16, %s365_s23, %s4861_s3  }
  0xd1   : > { %373 = sbr.rel (%p4862_p13) target bundleno = 1153 (0x481), region = 48  ;;  %p4863_p10 = scmp.eq.s32.totalorder (!%p4862_p13), %s4055_s20, 0 }
  0xd8   : > { %3801 = dma.done.wait (%p4863_p10), [#allocation7], 2048   ;;  %p4864_p1 = pmov %p4863_p10 }
  0xd9   : > { %s379_s22 = sand.u32 1, %s4055_s20   ;;  %s4196_s11 = sand.u32 1, %s3826_s25  }
  0xda   : > { %3803 = vsyncadd (%p4864_p1), [#allocation7], 4294965248  ;;  %s2607_s18 = sshll.u32 %s4196_s11, 7  ;;  %s380_s9 = scalar_lea.sflag [#allocation10], %s379_s22 }
  0xdb   : > { %s4199_s15 = scalar_lea.vmem [#allocation9], %s2607_s18  ;;  %p4865_p9 = scmp.ne.s32.totalorder %s4849_s1, 0 }
  0xdd   : > { %3805 = dma.done.wait (%p4865_p9), %s380_s9, 2064  }
  0xde   : > { %3807 = vsyncadd (%p4865_p9), %s380_s9, 4294965232  ;;  %s3446_s19 = smul.u32 1152, %s4196_s11  ;;  %s391_s13 = scalar_lea.vmem [#allocation11], %s4196_s11 }
  0xdf   : > { %s397_s23 = scalar_lea.sflag [#allocation13], %s379_s22 }
  0xe0   : > { %s4207_s16 = scalar_lea.vmem [#allocation12], %s3446_s19 }
  0xe1   : > { %3809 = dma.done.wait (%p4865_p9), %s397_s23, 18448  }
  0xe2   : > { %3811 = vsyncadd (%p4865_p9), %s397_s23, 4294948848  ;;  %s408_s12 = scalar_lea.vmem [#allocation14], %s4196_s11  ;;  %s414_s21 = scalar_lea.sflag [#allocation16], %s379_s22 }
  0xe3   : > { %s4214_s14 = scalar_lea.vmem [#allocation15], %s2607_s18 }
  0xe4   : > { %3813 = dma.done.wait (%p4865_p9), %s414_s21, 2064  }
  0xe5   : > { %3815 = vsyncadd (%p4865_p9), %s414_s21, 4294965232  ;;  %s425_s30 = scalar_lea.vmem [#allocation17], %s4196_s11  ;;  %p4866_p2 = scmp.ne.s32.totalorder %s4055_s20, 0 }
  0xe6   : > { %v517_v0 = vld [vmem:[#allocation6] sm:$0xff] (!%p4866_p2)  ;;  %v518_v1 = vld [vmem:[#allocation6 + $0x8] sm:$0xff] (!%p4866_p2)  ;;  %v519_v2 = vld [vmem:[#allocation6 + $0x10] sm:$0xff] (!%p4866_p2)  ;;  %v3845_v3 = vmov (!%p4866_p2), 0.0  }
  0xe7   : > { %476 = sbr.rel (%p4866_p2) target bundleno = 267 (0x10b), region = 80  ;;  %477 = vst [vmem:[#allocation4] sm:$0xff] (!%p4866_p2), %v3845_v3  ;;  %478 = vst [vmem:[#allocation4 + $0x8] sm:$0x3] (!%p4866_p2), %v3845_v3  ;;  %v520_v4 = vld [vmem:[#allocation6 + $0x18] sm:$0xff] (!%p4866_p2)  ;;  %v521_v5 = vld [vmem:[#allocation6 + $0x20] sm:$0xff] (!%p4866_p2) }
  0xe8   : > { %479 = vst [vmem:[#allocation4 + $0x10] sm:$0xff] (!%p4866_p2), %v3845_v3  ;;  %480 = vst [vmem:[#allocation4 + $0x18] sm:$0x3] (!%p4866_p2), %v3845_v3  ;;  %v522_v6 = vld [vmem:[#allocation6 + $0x28] sm:$0xff] (!%p4866_p2)  ;;  %v523_v7 = vld [vmem:[#allocation6 + $0x30] sm:$0xff] (!%p4866_p2) }
  0xe9   : > { %481 = vst [vmem:[#allocation4 + $0x20] sm:$0xff] (!%p4866_p2), %v3845_v3  ;;  %482 = vst [vmem:[#allocation4 + $0x28] sm:$0x3] (!%p4866_p2), %v3845_v3  ;;  %v524_v8 = vld [vmem:[#allocation6 + $0x38] sm:$0xff] (!%p4866_p2)  ;;  %v525_v9 = vld [vmem:[#allocation6 + $0x40] sm:$0xff] (!%p4866_p2) }
  0xea   : > { %483 = vst [vmem:[#allocation4 + $0x30] sm:$0xff] (!%p4866_p2), %v3845_v3  ;;  %484 = vst [vmem:[#allocation4 + $0x38] sm:$0x3] (!%p4866_p2), %v3845_v3  ;;  %v526_v10 = vld [vmem:[#allocation6 + $0x48] sm:$0xff] (!%p4866_p2)  ;;  %v527_v11 = vld [vmem:[#allocation6 + $0x50] sm:$0xff] (!%p4866_p2) }
  0xeb   : > { %485 = vst [vmem:[#allocation4 + $0x40] sm:$0xff] (!%p4866_p2), %v3845_v3  ;;  %486 = vst [vmem:[#allocation4 + $0x48] sm:$0x3] (!%p4866_p2), %v3845_v3  ;;  %v528_v12 = vld [vmem:[#allocation6 + $0x58] sm:$0xff] (!%p4866_p2)  ;;  %v529_v13 = vld [vmem:[#allocation6 + $0x60] sm:$0xff] (!%p4866_p2) }
  0xec   : > { %487 = vst [vmem:[#allocation4 + $0x50] sm:$0xff] (!%p4866_p2), %v3845_v3  ;;  %488 = vst [vmem:[#allocation4 + $0x58] sm:$0x3] (!%p4866_p2), %v3845_v3  ;;  %v530_v14 = vld [vmem:[#allocation6 + $0x68] sm:$0xff] (!%p4866_p2)  ;;  %v531_v15 = vld [vmem:[#allocation6 + $0x70] sm:$0xff] (!%p4866_p2) }
  0xed   : > { %489 = vst [vmem:[#allocation4 + $0x60] sm:$0xff] (!%p4866_p2), %v3845_v3  ;;  %490 = vst [vmem:[#allocation4 + $0x68] sm:$0x3] (!%p4866_p2), %v3845_v3  ;;  %v532_v16 = vld [vmem:[#allocation6 + $0x78] sm:$0xff] (!%p4866_p2) }
  0xee   : > { %491 = vst [vmem:[#allocation4 + $0x70] sm:$0xff] %v3845_v3  ;;  %492 = vst [vmem:[#allocation4 + $0x78] sm:$0x3] %v3845_v3 }
  0xef   : > { %493 = vst [vmem:[#allocation4 + $0x80] sm:$0xff] %v3845_v3  ;;  %494 = vst [vmem:[#allocation4 + $0x88] sm:$0x3] %v3845_v3 }
  0xf0   : > { %495 = vst [vmem:[#allocation4 + $0x90] sm:$0xff] %v3845_v3  ;;  %496 = vst [vmem:[#allocation4 + $0x98] sm:$0x3] %v3845_v3 }
  0xf1   : > { %497 = vst [vmem:[#allocation4 + $0xa0] sm:$0xff] %v3845_v3  ;;  %498 = vst [vmem:[#allocation4 + $0xa8] sm:$0x3] %v3845_v3 }
  0xf2   : > { %499 = vst [vmem:[#allocation4 + $0xb0] sm:$0xff] %v3845_v3  ;;  %500 = vst [vmem:[#allocation4 + $0xb8] sm:$0x3] %v3845_v3 }
  0xf3   : > { %501 = vst [vmem:[#allocation4 + $0xc0] sm:$0xff] %v3845_v3  ;;  %502 = vst [vmem:[#allocation4 + $0xc8] sm:$0x3] %v3845_v3 }
  0xf4   : > { %503 = vst [vmem:[#allocation4 + $0xd0] sm:$0xff] %v3845_v3  ;;  %504 = vst [vmem:[#allocation4 + $0xd8] sm:$0x3] %v3845_v3 }
  0xf5   : > { %505 = vst [vmem:[#allocation4 + $0xe0] sm:$0xff] %v3845_v3  ;;  %506 = vst [vmem:[#allocation4 + $0xe8] sm:$0x3] %v3845_v3 }
  0xf6   : > { %507 = vst [vmem:[#allocation4 + $0xf0] sm:$0xff] %v3845_v3  ;;  %508 = vst [vmem:[#allocation4 + $0xf8] sm:$0x3] %v3845_v3 }
  0xf7   : > { %509 = vst [vmem:[#allocation4 + $0x100] sm:$0xff] %v3845_v3  ;;  %510 = vst [vmem:[#allocation4 + $0x108] sm:$0x3] %v3845_v3 }
  0xf8   : > { %511 = vst [vmem:[#allocation4 + $0x110] sm:$0xff] %v3845_v3  ;;  %512 = vst [vmem:[#allocation4 + $0x118] sm:$0x3] %v3845_v3 }
  0xf9   : > { %513 = vst [vmem:[#allocation4 + $0x120] sm:$0xff] %v3845_v3  ;;  %514 = vst [vmem:[#allocation4 + $0x128] sm:$0x3] %v3845_v3 }
  0xfa   : > { %515 = vst [vmem:[#allocation4 + $0x130] sm:$0xff] %v3845_v3  ;;  %516 = vst [vmem:[#allocation4 + $0x138] sm:$0x3] %v3845_v3 }
  0xfb   : > { %533 = vst [vmem:[#allocation2] sm:$0xff] %v517_v0  ;;  %534 = vst [vmem:[#allocation2 + $0x8] sm:$0xff] %v518_v1 }
  0xfc   : > { %535 = vst [vmem:[#allocation2 + $0x10] sm:$0xff] %v519_v2  ;;  %565 = vst [vmem:[#allocation3] sm:$0xff] %v517_v0 }
  0xfd   : > { %566 = vst [vmem:[#allocation3 + $0x8] sm:$0xff] %v518_v1  ;;  %567 = vst [vmem:[#allocation3 + $0x10] sm:$0xff] %v519_v2 }
  0xfe   : > { %536 = vst [vmem:[#allocation2 + $0x18] sm:$0xff] %v520_v4  ;;  %537 = vst [vmem:[#allocation2 + $0x20] sm:$0xff] %v521_v5 }
  0xff   : > { %538 = vst [vmem:[#allocation2 + $0x28] sm:$0xff] %v522_v6  ;;  %568 = vst [vmem:[#allocation3 + $0x18] sm:$0xff] %v520_v4 }
 0x100   : > { %569 = vst [vmem:[#allocation3 + $0x20] sm:$0xff] %v521_v5  ;;  %570 = vst [vmem:[#allocation3 + $0x28] sm:$0xff] %v522_v6 }
 0x101   : > { %539 = vst [vmem:[#allocation2 + $0x30] sm:$0xff] %v523_v7  ;;  %540 = vst [vmem:[#allocation2 + $0x38] sm:$0xff] %v524_v8 }
 0x102   : > { %541 = vst [vmem:[#allocation2 + $0x40] sm:$0xff] %v525_v9  ;;  %571 = vst [vmem:[#allocation3 + $0x30] sm:$0xff] %v523_v7 }
 0x103   : > { %572 = vst [vmem:[#allocation3 + $0x38] sm:$0xff] %v524_v8  ;;  %573 = vst [vmem:[#allocation3 + $0x40] sm:$0xff] %v525_v9 }
 0x104   : > { %542 = vst [vmem:[#allocation2 + $0x48] sm:$0xff] %v526_v10  ;;  %543 = vst [vmem:[#allocation2 + $0x50] sm:$0xff] %v527_v11 }
 0x105   : > { %544 = vst [vmem:[#allocation2 + $0x58] sm:$0xff] %v528_v12  ;;  %574 = vst [vmem:[#allocation3 + $0x48] sm:$0xff] %v526_v10 }
 0x106   : > { %575 = vst [vmem:[#allocation3 + $0x50] sm:$0xff] %v527_v11  ;;  %576 = vst [vmem:[#allocation3 + $0x58] sm:$0xff] %v528_v12 }
 0x107   : > { %545 = vst [vmem:[#allocation2 + $0x60] sm:$0xff] %v529_v13  ;;  %546 = vst [vmem:[#allocation2 + $0x68] sm:$0xff] %v530_v14 }
 0x108   : > { %547 = vst [vmem:[#allocation2 + $0x70] sm:$0xff] %v531_v15  ;;  %577 = vst [vmem:[#allocation3 + $0x60] sm:$0xff] %v529_v13 }
 0x109   : > { %578 = vst [vmem:[#allocation3 + $0x68] sm:$0xff] %v530_v14  ;;  %579 = vst [vmem:[#allocation3 + $0x70] sm:$0xff] %v531_v15 }
 0x10a   : > { %548 = vst [vmem:[#allocation2 + $0x78] sm:$0xff] %v532_v16  ;;  %580 = vst [vmem:[#allocation3 + $0x78] sm:$0xff] %v532_v16 }
 0x10b PF: > { %v597_v17 = vld [vmem:[%s4199_s15] sm:$0xff]  ;;  %v598_v18 = vld [vmem:[%s4199_s15 + $0x8] sm:$0xff]  ;;  %v599_v19 = vld [vmem:[%s4199_s15 + $0x10] sm:$0xff]  ;;  %p2613_p4 = scmp.ne.s32.totalorder %s4055_s20, 1 }
 0x10c   : > { %v3204_v20 = vpack.c.bf16 %v598_v18, %v597_v17  ;;  %v600_v21 = vld [vmem:[%s4199_s15 + $0x18] sm:$0xff]  ;;  %v601_v23 = vld [vmem:[%s4199_s15 + $0x20] sm:$0xff]  ;;  %v602_v24 = vld [vmem:[%s4199_s15 + $0x28] sm:$0xff] }
 0x10d   : > { %v3208_v22 = vpack.c.bf16 %v600_v21, %v599_v19  ;;  %v3212_v25 = vpack.c.bf16 %v602_v24, %v601_v23  ;;  %v581_v26 = vld [vmem:[#allocation2] sm:$0xff]  ;;  %v603_v27 = vld [vmem:[%s4199_s15 + $0x30] sm:$0xff]  ;;  %v604_v28 = vld [vmem:[%s4199_s15 + $0x38] sm:$0xff] }
 0x10e   : > { %3205 = vmatprep.subr.bf16.mxu0 %v3204_v20  ;;  %3068 = vmatprep.mubr.f32.mxu0 %v581_v26  ;;  %v3216_v29 = vpack.c.bf16 %v604_v28, %v603_v27  ;;  %v605_v30 = vld [vmem:[%s4199_s15 + $0x40] sm:$0xff]  ;;  %v606_v31 = vld [vmem:[%s4199_s15 + $0x48] sm:$0xff]  ;;  %v1249_v38 = vld [vmem:[%s4207_s16 + $0x90] sm:$0xff] }
 0x10f   : > { %3207 = vmatpush3.bf16.msra.mxu0 %v3204_v20  ;;  %v1247_v32 = vld [vmem:[%s4207_s16 + $0x80] sm:$0xff]  ;;  %v1248_v33 = vld [vmem:[%s4207_s16 + $0x88] sm:$0xff]  ;;  %v1250_v39 = vld [vmem:[%s4207_s16 + $0x98] sm:$0xff]  ;;  %v3220_v41 = vpack.c.bf16 %v606_v31, %v605_v30 }
 0x110   : > { %3209 = vmatprep.subr.bf16.mxu0 %v3208_v22  ;;  %v1231_v34 = vld [vmem:[%s4207_s16] sm:$0xff]  ;;  %v1232_v35 = vld [vmem:[%s4207_s16 + $0x8] sm:$0xff]  ;;  %v3236_v36 = vpack.c.bf16 %v1248_v33, %v1247_v32  ;;  %v1233_v40 = vld [vmem:[%s4207_s16 + $0x10] sm:$0xff]  ;;  %v3240_v42 = vpack.c.bf16 %v1250_v39, %v1249_v38 }
 0x111   : > { %v3238_v37 = vpack.c.bf16 %v1232_v35, %v1231_v34  ;;  %v1234_v43 = vld [vmem:[%s4207_s16 + $0x18] sm:$0xff]  ;;  %v607_v44 = vld [vmem:[%s4199_s15 + $0x50] sm:$0xff]  ;;  %v1251_v46 = vld [vmem:[%s4207_s16 + $0xa0] sm:$0xff] }
 0x112   : > { %v608_v45 = vld [vmem:[%s4199_s15 + $0x58] sm:$0xff]  ;;  %3237 = vmatprep.subr.bf16.mxu1 %v3236_v36  ;;  %v3242_v47 = vpack.c.bf16 %v1234_v43, %v1233_v40  ;;  %v1252_v48 = vld [vmem:[%s4207_s16 + $0xa8] sm:$0xff]  ;;  %v1235_v50 = vld [vmem:[%s4207_s16 + $0x20] sm:$0xff] }
 0x113   : > { %3211 = vmatpush3.bf16.msra.mxu0 %v3208_v22  ;;  %3239 = vmatpush3.bf16.msra.mxu1 %v3238_v37  ;;  %v3244_v49 = vpack.c.bf16 %v1252_v48, %v1251_v46  ;;  %v1236_v51 = vld [vmem:[%s4207_s16 + $0x28] sm:$0xff]  ;;  %v3224_v52 = vpack.c.bf16 %v608_v45, %v607_v44  ;;  %v1253_v53 = vld [vmem:[%s4207_s16 + $0xb0] sm:$0xff]  ;;  %v1254_v54 = vld [vmem:[%s4207_s16 + $0xb8] sm:$0xff] }
 0x114   : > { %3213 = vmatprep.subr.bf16.mxu0 %v3212_v25  ;;  %3241 = vmatprep.subr.bf16.mxu1 %v3240_v42  ;;  %v609_v55 = vld [vmem:[%s4199_s15 + $0x60] sm:$0xff]  ;;  %v610_v56 = vld [vmem:[%s4199_s15 + $0x68] sm:$0xff]  ;;  %v3246_v57 = vpack.c.bf16 %v1236_v51, %v1235_v50  ;;  %v3248_v58 = vpack.c.bf16 %v1254_v54, %v1253_v53  ;;  %v1237_v59 = vld [vmem:[%s4207_s16 + $0x30] sm:$0xff] }
 0x115   : > { %v1238_v60 = vld [vmem:[%s4207_s16 + $0x38] sm:$0xff]  ;;  %v3228_v61 = vpack.c.bf16 %v610_v56, %v609_v55  ;;  %v1255_v62 = vld [vmem:[%s4207_s16 + $0xc0] sm:$0xff]  ;;  %v1256_v63 = vld [vmem:[%s4207_s16 + $0xc8] sm:$0xff] }
 0x116   : > { %v611_v0 = vld [vmem:[%s4199_s15 + $0x70] sm:$0xff]  ;;  %v612_v1 = vld [vmem:[%s4199_s15 + $0x78] sm:$0xff]  ;;  %v3250_v2 = vpack.c.bf16 %v1238_v60, %v1237_v59  ;;  %v3252_v3 = vpack.c.bf16 %v1256_v63, %v1255_v62  ;;  %v1239_v4 = vld [vmem:[%s4207_s16 + $0x40] sm:$0xff] }
 0x117   : > { %3215 = vmatpush3.bf16.msra.mxu0 %v3212_v25  ;;  %3243 = vmatpush3.bf16.msra.mxu1 %v3242_v47  ;;  %v1240_v5 = vld [vmem:[%s4207_s16 + $0x48] sm:$0xff]  ;;  %v3232_v6 = vpack.c.bf16 %v612_v1, %v611_v0  ;;  %v1257_v7 = vld [vmem:[%s4207_s16 + $0xd0] sm:$0xff]  ;;  %v1258_v8 = vld [vmem:[%s4207_s16 + $0xd8] sm:$0xff] }
 0x118   : > { %3217 = vmatprep.subr.bf16.mxu0 %v3216_v29  ;;  %3245 = vmatprep.subr.bf16.mxu1 %v3244_v49  ;;  %v1279_v9 = vld [vmem:[%s4207_s16 + $0x180] sm:$0xff]  ;;  %v1280_v10 = vld [vmem:[%s4207_s16 + $0x188] sm:$0xff]  ;;  %v3254_v11 = vpack.c.bf16 %v1240_v5, %v1239_v4  ;;  %v3256_v12 = vpack.c.bf16 %v1258_v8, %v1257_v7  ;;  %v1241_v13 = vld [vmem:[%s4207_s16 + $0x50] sm:$0xff] }
 0x119   : > { %v1242_v14 = vld [vmem:[%s4207_s16 + $0x58] sm:$0xff]  ;;  %v3268_v15 = vpack.c.bf16 %v1280_v10, %v1279_v9  ;;  %v1263_v16 = vld [vmem:[%s4207_s16 + $0x100] sm:$0xff]  ;;  %v1264_v17 = vld [vmem:[%s4207_s16 + $0x108] sm:$0xff] }
 0x11a   : > { %v1281_v18 = vld [vmem:[%s4207_s16 + $0x190] sm:$0xff]  ;;  %v1282_v19 = vld [vmem:[%s4207_s16 + $0x198] sm:$0xff]  ;;  %v3258_v20 = vpack.c.bf16 %v1242_v14, %v1241_v13  ;;  %v582_v21 = vld [vmem:[#allocation2 + $0x8] sm:$0xff]  ;;  %v3270_v22 = vpack.c.bf16 %v1264_v17, %v1263_v16 }
 0x11b   : > { %3219 = vmatpush3.bf16.msra.mxu0 %v3216_v29  ;;  %3247 = vmatpush3.bf16.msra.mxu1 %v3246_v57  ;;  %v583_v23 = vld [vmem:[#allocation2 + $0x10] sm:$0xff]  ;;  %v3272_v24 = vpack.c.bf16 %v1282_v19, %v1281_v18  ;;  %v1266_v26 = vld [vmem:[%s4207_s16 + $0x118] sm:$0xff]  ;;  %v1283_v27 = vld [vmem:[%s4207_s16 + $0x1a0] sm:$0xff] }
 0x11c   : > { %3221 = vmatprep.subr.bf16.mxu0 %v3220_v41  ;;  %3249 = vmatprep.subr.bf16.mxu1 %v3248_v58  ;;  %v1265_v25 = vld [vmem:[%s4207_s16 + $0x110] sm:$0xff]  ;;  %v1284_v28 = vld [vmem:[%s4207_s16 + $0x1a8] sm:$0xff]  ;;  %v585_v31 = vld [vmem:[#allocation2 + $0x20] sm:$0xff] }
 0x11d   : > { %v584_v29 = vld [vmem:[#allocation2 + $0x18] sm:$0xff]  ;;  %v3274_v30 = vpack.c.bf16 %v1266_v26, %v1265_v25  ;;  %v3276_v32 = vpack.c.bf16 %v1284_v28, %v1283_v27  ;;  %v1267_v33 = vld [vmem:[%s4207_s16 + $0x120] sm:$0xff]  ;;  %v1268_v34 = vld [vmem:[%s4207_s16 + $0x128] sm:$0xff] }
 0x11e   : > { %v1285_v35 = vld [vmem:[%s4207_s16 + $0x1b0] sm:$0xff]  ;;  %v1286_v36 = vld [vmem:[%s4207_s16 + $0x1b8] sm:$0xff]  ;;  %v586_v37 = vld [vmem:[#allocation2 + $0x28] sm:$0xff]  ;;  %v3278_v38 = vpack.c.bf16 %v1268_v34, %v1267_v33 }
 0x11f   : > { %3223 = vmatpush3.bf16.msra.mxu0 %v3220_v41  ;;  %3251 = vmatpush3.bf16.msra.mxu1 %v3250_v2  ;;  %v587_v39 = vld [vmem:[#allocation2 + $0x30] sm:$0xff]  ;;  %v3280_v40 = vpack.c.bf16 %v1286_v36, %v1285_v35  ;;  %v1270_v42 = vld [vmem:[%s4207_s16 + $0x138] sm:$0xff]  ;;  %v1287_v43 = vld [vmem:[%s4207_s16 + $0x1c0] sm:$0xff] }
 0x120   : > { %3225 = vmatprep.subr.bf16.mxu0 %v3224_v52  ;;  %3253 = vmatprep.subr.bf16.mxu1 %v3252_v3  ;;  %v1269_v41 = vld [vmem:[%s4207_s16 + $0x130] sm:$0xff]  ;;  %v1288_v44 = vld [vmem:[%s4207_s16 + $0x1c8] sm:$0xff]  ;;  %v589_v47 = vld [vmem:[#allocation2 + $0x40] sm:$0xff] }
 0x121   : > { %v588_v45 = vld [vmem:[#allocation2 + $0x38] sm:$0xff]  ;;  %v3282_v46 = vpack.c.bf16 %v1270_v42, %v1269_v41  ;;  %v3284_v48 = vpack.c.bf16 %v1288_v44, %v1287_v43  ;;  %v590_v49 = vld [vmem:[#allocation2 + $0x48] sm:$0xff]  ;;  %v591_v50 = vld [vmem:[#allocation2 + $0x50] sm:$0xff] }
 0x122   : > { %v592_v51 = vld [vmem:[#allocation2 + $0x58] sm:$0xff]  ;;  %v594_v53 = vld [vmem:[#allocation2 + $0x68] sm:$0xff]  ;;  %v595_v54 = vld [vmem:[#allocation2 + $0x70] sm:$0xff] }
 0x123   : > { %3227 = vmatpush3.bf16.msra.mxu0 %v3224_v52  ;;  %3255 = vmatpush3.bf16.msra.mxu1 %v3254_v11  ;;  %v593_v52 = vld [vmem:[#allocation2 + $0x60] sm:$0xff]  ;;  %v596_v55 = vld [vmem:[#allocation2 + $0x78] sm:$0xff]  ;;  %v1260_v57 = vld [vmem:[%s4207_s16 + $0xe8] sm:$0xff] }
 0x124   : > { %3229 = vmatprep.subr.bf16.mxu0 %v3228_v61  ;;  %3257 = vmatprep.subr.bf16.mxu1 %v3256_v12  ;;  %v1259_v56 = vld [vmem:[%s4207_s16 + $0xe0] sm:$0xff]  ;;  %v1244_v60 = vld [vmem:[%s4207_s16 + $0x68] sm:$0xff]  ;;  %v1261_v1 = vld [vmem:[%s4207_s16 + $0xf0] sm:$0xff] }
 0x125   : > { %v3260_v58 = vpack.c.bf16 %v1260_v57, %v1259_v56  ;;  %v1243_v59 = vld [vmem:[%s4207_s16 + $0x60] sm:$0xff]  ;;  %v1272_v63 = vld [vmem:[%s4207_s16 + $0x148] sm:$0xff]  ;;  %v1262_v2 = vld [vmem:[%s4207_s16 + $0xf8] sm:$0xff] }
 0x126   : > { %v1271_v62 = vld [vmem:[%s4207_s16 + $0x140] sm:$0xff]  ;;  %v3264_v3 = vpack.c.bf16 %v1262_v2, %v1261_v1  ;;  %v1245_v4 = vld [vmem:[%s4207_s16 + $0x70] sm:$0xff]  ;;  %v1246_v5 = vld [vmem:[%s4207_s16 + $0x78] sm:$0xff] }
 0x127   : > { %3231 = vmatpush3.bf16.msra.mxu0 %v3228_v61  ;;  %3259 = vmatpush3.bf16.msra.mxu1 %v3258_v20  ;;  %v3262_v61 = vpack.c.bf16 %v1244_v60, %v1243_v59  ;;  %v3286_v0 = vpack.c.bf16 %v1272_v63, %v1271_v62  ;;  %v1290_v7 = vld [vmem:[%s4207_s16 + $0x1d8] sm:$0xff]  ;;  %v3266_v8 = vpack.c.bf16 %v1246_v5, %v1245_v4  ;;  %v1273_v10 = vld [vmem:[%s4207_s16 + $0x150] sm:$0xff]  ;;  %v1291_v14 = vld [vmem:[%s4207_s16 + $0x1e0] sm:$0xff] }
 0x128   : > { %3233 = vmatprep.subr.bf16.mxu0 %v3232_v6  ;;  %3261 = vmatprep.subr.bf16.mxu1 %v3260_v58  ;;  %v1274_v11 = vld [vmem:[%s4207_s16 + $0x158] sm:$0xff]  ;;  %v1275_v18 = vld [vmem:[%s4207_s16 + $0x160] sm:$0xff]  ;;  %v1276_v19 = vld [vmem:[%s4207_s16 + $0x168] sm:$0xff] }
 0x129   : > { %v3290_v12 = vpack.c.bf16 %v1274_v11, %v1273_v10  ;;  %v830_v13 = vld [vmem:[#allocation4 + $0x1] sm:$0xff]  ;;  %v3294_v20 = vpack.c.bf16 %v1276_v19, %v1275_v18  ;;  %v1312_v27 = vld [vmem:[%s4207_s16 + $0x288] sm:$0xff]  ;;  %v1313_v33 = vld [vmem:[%s4207_s16 + $0x290] sm:$0xff] }
 0x12a   : > { %1446 = vmatprep.mubr.f32.mxu1 %v830_v13  ;;  %v798_v16 = vld [vmem:[#allocation4] sm:$0xff]  ;;  %v1297_v36 = vld [vmem:[%s4207_s16 + $0x210] sm:$0xff]  ;;  %v1300_v43 = vld [vmem:[%s4207_s16 + $0x228] sm:$0xff] }
 0x12b   : > { %3235 = vmatpush3.bf16.msra.mxu0 %v3232_v6  ;;  %3263 = vmatpush3.bf16.msra.mxu1 %v3262_v61  ;;  %v1289_v6 = vld [vmem:[%s4207_s16 + $0x1d0] sm:$0xff]  ;;  %v1278_v25 = vld [vmem:[%s4207_s16 + $0x178] sm:$0xff]  ;;  %v1311_v26 = vld [vmem:[%s4207_s16 + $0x280] sm:$0xff] }
 0x12c   : > { %3269 = vmatprep.subr.bf16.mxu0 %v3268_v15  ;;  %v3288_v9 = vpack.c.bf16 %v1290_v7, %v1289_v6  ;;  %3265 = vmatprep.subr.bf16.mxu1 %v3264_v3  ;;  %v1292_v15 = vld [vmem:[%s4207_s16 + $0x1e8] sm:$0xff]  ;;  %v1295_v28 = vld [vmem:[%s4207_s16 + $0x200] sm:$0xff]  ;;  %v1314_v34 = vld [vmem:[%s4207_s16 + $0x298] sm:$0xff] }
 0x12d   : > { %v3292_v17 = vpack.c.bf16 %v1292_v15, %v1291_v14  ;;  %v3304_v35 = vpack.c.bf16 %v1314_v34, %v1313_v33  ;;  %v1299_v42 = vld [vmem:[%s4207_s16 + $0x220] sm:$0xff]  ;;  %v1304_v58 = vld [vmem:[%s4207_s16 + $0x248] sm:$0xff]  ;;  %v1321_v60 = vld [vmem:[%s4207_s16 + $0x2d0] sm:$0xff] }
 0x12e   : > { %3069 = vmatmul.mubr.f32.vlgmr.msra.gmra.mrb[0].mxu0 %v582_v21  ;;  %v1293_v21 = vld [vmem:[%s4207_s16 + $0x1f0] sm:$0xff]  ;;  %v3310_v44 = vpack.c.bf16 %v1300_v43, %v1299_v42  ;;  %v1303_v57 = vld [vmem:[%s4207_s16 + $0x240] sm:$0xff]  ;;  %v1322_v61 = vld [vmem:[%s4207_s16 + $0x2d8] sm:$0xff] }
 0x12f   : > { %3071 = vmatprep.mubr.f32.mxu0 %v583_v23  ;;  %3271 = vmatpush3.bf16.msra.mxu0 %v3270_v22  ;;  %v1294_v22 = vld [vmem:[%s4207_s16 + $0x1f8] sm:$0xff]  ;;  %v3318_v59 = vpack.c.bf16 %v1304_v58, %v1303_v57  ;;  %v3320_v62 = vpack.c.bf16 %v1322_v61, %v1321_v60  ;;  %v1305_v63 = vld [vmem:[%s4207_s16 + $0x250] sm:$0xff]  ;;  %v1323_v2 = vld [vmem:[%s4207_s16 + $0x2e0] sm:$0xff] }
 0x130   : > { %3273 = vmatprep.subr.bf16.mxu0 %v3272_v24  ;;  %3267 = vmatpush3.bf16.msra.mxu1 %v3266_v8  ;;  %v3296_v23 = vpack.c.bf16 %v1294_v22, %v1293_v21  ;;  %v1277_v24 = vld [vmem:[%s4207_s16 + $0x170] sm:$0xff]  ;;  %v1324_v3 = vld [vmem:[%s4207_s16 + $0x2e8] sm:$0xff]  ;;  %v1307_v5 = vld [vmem:[%s4207_s16 + $0x260] sm:$0xff] }
 0x131   : > { %v3324_v4 = vpack.c.bf16 %v1324_v3, %v1323_v2  ;;  %v1308_v6 = vld [vmem:[%s4207_s16 + $0x268] sm:$0xff]  ;;  %v1325_v8 = vld [vmem:[%s4207_s16 + $0x2f0] sm:$0xff]  ;;  %v1359_v14 = vld [vmem:[%s4207_s16 + $0x400] sm:$0xff] }
 0x132   : > { %3072 = vmatmul.mubr.f32.gmra.mrb[2].mxu0 %v584_v29  ;;  %v3298_v29 = vpack.c.bf16 %v1278_v25, %v1277_v24  ;;  %v3326_v7 = vpack.c.bf16 %v1308_v6, %v1307_v5  ;;  %v1309_v11 = vld [vmem:[%s4207_s16 + $0x270] sm:$0xff]  ;;  %v1360_v15 = vld [vmem:[%s4207_s16 + $0x408] sm:$0xff]  ;;  %v1327_v33 = vld [vmem:[%s4207_s16 + $0x300] sm:$0xff] }
 0x133   : > { %3074 = vmatprep.mubr.f32.mxu0 %v585_v31  ;;  %3275 = vmatpush3.bf16.msra.mxu0 %v3274_v30  ;;  %v3300_v30 = vpack.c.bf16 %v1312_v27, %v1311_v26  ;;  %v1296_v31 = vld [vmem:[%s4207_s16 + $0x208] sm:$0xff]  ;;  %v1331_v61 = vld [vmem:[%s4207_s16 + $0x320] sm:$0xff]  ;;  %v1350_v2 = vld [vmem:[%s4207_s16 + $0x3b8] sm:$0xff] }
 0x134   : > { %3277 = vmatprep.subr.bf16.mxu0 %v3276_v32  ;;  %1447 = vmatmul.mubr.f32.vlgmr.msra.gmra.mrb[0].mxu1 %v798_v16  ;;  %v3302_v32 = vpack.c.bf16 %v1296_v31, %v1295_v28  ;;  %v4339_v16 = vpack.c.bf16 %v1360_v15, %v1359_v14  ;;  %v1328_v34 = vld [vmem:[%s4207_s16 + $0x308] sm:$0xff]  ;;  %v1351_v14 = vld [vmem:[%s4207_s16 + $0x3c0] sm:$0xff] }
 0x135   : > { %3301 = vmatprep.subr.bf16.mxu1 %v3300_v30  ;;  %v3334_v42 = vpack.c.bf16 %v1328_v34, %v1327_v33  ;;  %v1352_v15 = vld [vmem:[%s4207_s16 + $0x3c8] sm:$0xff] }
 0x136   : > { %3075 = vmatmul.mubr.f32.gmra.mrb[4].mxu0 %v586_v37  ;;  %3303 = vmatpush3.bf16.msra.mxu1 %v3302_v32  ;;  %v1298_v37 = vld [vmem:[%s4207_s16 + $0x218] sm:$0xff] }
 0x137   : > { %3077 = vmatprep.mubr.f32.mxu0 %v587_v39  ;;  %3279 = vmatpush3.bf16.msra.mxu0 %v3278_v38  ;;  %v3306_v38 = vpack.c.bf16 %v1298_v37, %v1297_v36  ;;  %v1315_v39 = vld [vmem:[%s4207_s16 + $0x2a0] sm:$0xff]  ;;  %v1345_v36 = vld [vmem:[%s4207_s16 + $0x390] sm:$0xff]  ;;  %v1346_v37 = vld [vmem:[%s4207_s16 + $0x398] sm:$0xff] }
 0x138   : > { %3281 = vmatprep.subr.bf16.mxu0 %v3280_v40  ;;  %3305 = vmatprep.subr.bf16.mxu1 %v3304_v35  ;;  %v1316_v40 = vld [vmem:[%s4207_s16 + $0x2a8] sm:$0xff] }
 0x139   : > { %v3308_v41 = vpack.c.bf16 %v1316_v40, %v1315_v39  ;;  %v862_v39 = vld [vmem:[#allocation4 + $0x2] sm:$0xff] }
 0x13a   : > { %3078 = vmatmul.mubr.f32.gmra.mrb[6].mxu0 %v588_v45  ;;  %3307 = vmatpush3.bf16.msra.mxu1 %v3306_v38  ;;  %v1317_v45 = vld [vmem:[%s4207_s16 + $0x2b0] sm:$0xff] }
 0x13b   : > { %3080 = vmatprep.mubr.f32.mxu0 %v589_v47  ;;  %3283 = vmatpush3.bf16.msra.mxu0 %v3282_v46  ;;  %v1318_v46 = vld [vmem:[%s4207_s16 + $0x2b8] sm:$0xff] }
 0x13c   : > { %3285 = vmatprep.subr.bf16.mxu0 %v3284_v48  ;;  %3309 = vmatprep.subr.bf16.mxu1 %v3308_v41  ;;  %v3312_v47 = vpack.c.bf16 %v1318_v46, %v1317_v45  ;;  %v1301_v48 = vld [vmem:[%s4207_s16 + $0x230] sm:$0xff]  ;;  %v3336_v46 = vpack.c.bf16 %v1346_v37, %v1345_v36  ;;  %v1354_v36 = vld [vmem:[%s4207_s16 + $0x3d8] sm:$0xff] }
 0x13e   : > { %3081 = vmatmul.mubr.f32.gmra.mrb[8].mxu0 %v590_v49  ;;  %3311 = vmatpush3.bf16.msra.mxu1 %v3310_v44  ;;  %v1302_v49 = vld [vmem:[%s4207_s16 + $0x238] sm:$0xff] }
 0x13f   : > { %3083 = vmatprep.mubr.f32.mxu0 %v591_v50  ;;  %3287 = vmatpush3.bf16.msra.mxu0 %v3286_v0  ;;  %v3314_v50 = vpack.c.bf16 %v1302_v49, %v1301_v48  ;;  %v1306_v0 = vld [vmem:[%s4207_s16 + $0x258] sm:$0xff] }
 0x140   : > { %3289 = vmatprep.subr.bf16.mxu0 %v3288_v9  ;;  %3313 = vmatprep.subr.bf16.mxu1 %v3312_v47  ;;  %v3322_v1 = vpack.c.bf16 %v1306_v0, %v1305_v63  ;;  %v1326_v9 = vld [vmem:[%s4207_s16 + $0x2f8] sm:$0xff]  ;;  %v1329_v47 = vld [vmem:[%s4207_s16 + $0x310] sm:$0xff] }
 0x141   : > { %v3328_v10 = vpack.c.bf16 %v1326_v9, %v1325_v8  ;;  %v1330_v48 = vld [vmem:[%s4207_s16 + $0x318] sm:$0xff] }
 0x142   : > { %3084 = vmatmul.mubr.f32.gmra.mrb[10].mxu0 %v592_v51  ;;  %3315 = vmatpush3.bf16.msra.mxu1 %v3314_v50  ;;  %v1343_v51 = vld [vmem:[%s4207_s16 + $0x380] sm:$0xff] }
 0x143   : > { %3086 = vmatprep.mubr.f32.mxu0 %v593_v52  ;;  %3291 = vmatpush3.bf16.msra.mxu0 %v3290_v12  ;;  %v1344_v52 = vld [vmem:[%s4207_s16 + $0x388] sm:$0xff]  ;;  %v1310_v12 = vld [vmem:[%s4207_s16 + $0x278] sm:$0xff]  ;;  %v1347_v50 = vld [vmem:[%s4207_s16 + $0x3a0] sm:$0xff] }
 0x144   : > { %3293 = vmatprep.subr.bf16.mxu0 %v3292_v17  ;;  %v3330_v13 = vpack.c.bf16 %v1310_v12, %v1309_v11  ;;  %v4344_v17 = vld [vmem:[%s391_s13] ss:$0 sm:$0xff] }
 0x145   : > { %v1334_v11 = vld [vmem:[%s4207_s16 + $0x338] sm:$0xff] }
 0x146   : > { %3087 = vmatmul.mubr.f32.gmra.mrb[12].mxu0 %v594_v53  ;;  %v3332_v53 = vpack.c.bf16 %v1344_v52, %v1343_v51  ;;  %v1348_v51 = vld [vmem:[%s4207_s16 + $0x3a8] sm:$0xff] }
 0x147   : > { %3089 = vmatprep.mubr.f32.mxu0 %v595_v54  ;;  %3295 = vmatpush3.bf16.msra.mxu0 %v3294_v20  ;;  %v1319_v54 = vld [vmem:[%s4207_s16 + $0x2c0] sm:$0xff]  ;;  %v3340_v60 = vpack.c.bf16 %v1348_v51, %v1347_v50  ;;  %v1356_v51 = vld [vmem:[%s4207_s16 + $0x3e8] sm:$0xff] }
 0x148   : > { %3297 = vmatprep.subr.bf16.mxu0 %v3296_v23  ;;  %v1355_v50 = vld [vmem:[%s4207_s16 + $0x3e0] sm:$0xff] }
 0x14a   : > { %3090 = vmatmul.mubr.f32.gmra.mrb[14].mxu0 %v596_v55  ;;  %v1320_v55 = vld [vmem:[%s4207_s16 + $0x2c8] sm:$0xff] }
 0x14b   : > { %3299 = vmatpush3.bf16.msra.mxu0 %v3298_v29  ;;  %v3316_v56 = vpack.c.bf16 %v1320_v55, %v1319_v54 }
 0x14c   : > { %3333 = vmatprep.subr.bf16.mxu0 %v3332_v53 }
 0x14d   : > { %3317 = vmatprep.subr.bf16.mxu1 %v3316_v56  ;;  %v3338_v56 = vpack.c.bf16 %v1330_v48, %v1329_v47  ;;  %v1338_v47 = vld [vmem:[%s4207_s16 + $0x358] sm:$0xff] }
 0x14e   : > { %3319 = vmatpush3.bf16.msra.mxu1 %v3318_v59 }
 0x14f   : > { %3321 = vmatprep.subr.bf16.mxu1 %v3320_v62  ;;  %v1332_v62 = vld [vmem:[%s4207_s16 + $0x328] sm:$0xff] }
 0x150   : > { %v3342_v6 = vpack.c.bf16 %v1332_v62, %v1331_v61  ;;  %v1339_v61 = vld [vmem:[%s4207_s16 + $0x360] sm:$0xff]  ;;  %v1340_v62 = vld [vmem:[%s4207_s16 + $0x368] sm:$0xff] }
 0x152   : > { %3323 = vmatpush3.bf16.msra.mxu1 %v3322_v1  ;;  %v1349_v1 = vld [vmem:[%s4207_s16 + $0x3b0] sm:$0xff] }
 0x153   : > { %3325 = vmatprep.subr.bf16.mxu1 %v3324_v4  ;;  %v3344_v9 = vpack.c.bf16 %v1350_v2, %v1349_v1  ;;  %v1357_v1 = vld [vmem:[%s4207_s16 + $0x3f0] sm:$0xff]  ;;  %v1358_v2 = vld [vmem:[%s4207_s16 + $0x3f8] sm:$0xff] }
 0x156   : > { %3327 = vmatpush3.bf16.msra.mxu1 %v3326_v7 }
 0x157   : > { %3329 = vmatprep.subr.bf16.mxu1 %v3328_v10  ;;  %v1333_v10 = vld [vmem:[%s4207_s16 + $0x330] sm:$0xff] }
 0x15a   : > { %3331 = vmatpush3.bf16.msra.mxu1 %v3330_v13 }
 0x15b   : > { %3365 = vmatprep.subr.bf16.mxu1 %v4339_v16 }
 0x201   : > { %v3070_v18 = vpop.f32.mrb[0].mxu0 }
 0x202   : > { %v692_v19 = vadd.f32 %v3070_v18, %v4344_v17  ;;  %v686_v20 = vpop.f32.mrb[1].mxu0 }
 0x203   : > { %v687_v21 = vadd.f32 %v4344_v17, %v686_v20 }
 0x204   : > { %v4348_v22 = vmax.f32 %v692_v19, 0.0 }
 0x205   : > { %v4350_v23 = vmax.f32 %v687_v21, 0.0  ;;  %v3073_v24 = vpop.f32.mrb[2].mxu0 }
 0x206   : > { %783 = vst [vmem:[#allocation4 + $0x21] sm:$0xff] %v4348_v22  ;;  %v702_v25 = vadd.f32 %v3073_v24, %v4344_v17  ;;  %v696_v26 = vpop.f32.mrb[3].mxu0  ;;  %v3346_v24 = vpack.c.bf16 %v1334_v11, %v1333_v10 }
 0x207   : > { %782 = vst [vmem:[#allocation4 + $0x11] sm:$0xff] %v4350_v23  ;;  %v697_v27 = vadd.f32 %v4344_v17, %v696_v26  ;;  %1451 = vmatprep.mubr.f32.mxu1 %v4350_v23 }
 0x208   : > { %v4357_v28 = vmax.f32 %v702_v25, 0.0 }
 0x209   : > { %v4359_v29 = vmax.f32 %v697_v27, 0.0  ;;  %v3076_v30 = vpop.f32.mrb[4].mxu0 }
 0x20a   : > { %785 = vst [vmem:[#allocation4 + $0x41] sm:$0xff] %v4357_v28  ;;  %v712_v31 = vadd.f32 %v3076_v30, %v4344_v17  ;;  %v706_v32 = vpop.f32.mrb[5].mxu0  ;;  %v3348_v30 = vpack.c.bf16 %v1352_v15, %v1351_v14 }
 0x20b   : > { %784 = vst [vmem:[#allocation4 + $0x31] sm:$0xff] %v4359_v29  ;;  %v707_v35 = vadd.f32 %v4344_v17, %v706_v32  ;;  %v1336_v32 = vld [vmem:[%s4207_s16 + $0x348] sm:$0xff] }
 0x20c   : > { %v4369_v38 = vmax.f32 %v712_v31, 0.0  ;;  %v1335_v31 = vld [vmem:[%s4207_s16 + $0x340] sm:$0xff] }
 0x20d   : > { %v4371_v40 = vmax.f32 %v707_v35, 0.0  ;;  %v3079_v41 = vpop.f32.mrb[6].mxu0  ;;  %v4382_v52 = vld [vmem:[#allocation4 + $0x20] sm:$0xff]  ;;  %v1353_v35 = vld [vmem:[%s4207_s16 + $0x3d0] sm:$0xff] }
 0x20e   : > { %v894_v43 = vld [vmem:[#allocation4 + $0x10] sm:$0xff]  ;;  %787 = vst [vmem:[#allocation4 + $0x61] sm:$0xff] %v4369_v38  ;;  %v722_v44 = vadd.f32 %v3079_v41, %v4344_v17  ;;  %v716_v45 = vpop.f32.mrb[7].mxu0  ;;  %v4414_v12 = vld [vmem:[#allocation4 + $0x22] sm:$0xff] }
 0x20f   : > { %1591 = vmatprep.mubr.f32.mxu0 %v894_v43  ;;  %1452 = vmatmul.mubr.f32.gmra.mrb[2].mxu1 %v894_v43  ;;  %786 = vst [vmem:[#allocation4 + $0x51] sm:$0xff] %v4371_v40  ;;  %v717_v49 = vadd.f32 %v4344_v17, %v716_v45  ;;  %v4396_v63 = vld [vmem:[#allocation4 + $0x12] sm:$0xff]  ;;  %v3352_v45 = vpack.c.bf16 %v1354_v36, %v1353_v35 }
 0x210   : > { %1592 = vmatmul.mubr.f32.vlgmr.msra.gmra.mrb[16].mxu0 %v862_v39  ;;  %1456 = vmatprep.mubr.f32.mxu1 %v4348_v22  ;;  %v4384_v53 = vmax.f32 %v722_v44, 0.0 }
 0x211   : > { %1596 = vmatprep.mubr.f32.mxu0 %v4382_v52  ;;  %v4387_v54 = vmax.f32 %v717_v49, 0.0  ;;  %v3082_v55 = vpop.f32.mrb[8].mxu0  ;;  %3335 = vmatpush3.bf16.msra.mxu0 %v3334_v42  ;;  %v4422_v18 = vld [vmem:[#allocation4 + $0x40] sm:$0xff]  ;;  %v3350_v42 = vpack.c.bf16 %v1336_v32, %v1335_v31 }
 0x212   : > { %v4389_v57 = vld [vmem:[#allocation4 + $0x30] sm:$0xff]  ;;  %789 = vst [vmem:[#allocation4 + $0x81] sm:$0xff] %v4384_v53  ;;  %v732_v58 = vadd.f32 %v3082_v55, %v4344_v17  ;;  %v726_v59 = vpop.f32.mrb[9].mxu0  ;;  %3337 = vmatprep.subr.bf16.mxu0 %v3336_v46  ;;  %v4454_v48 = vld [vmem:[#allocation4 + $0x42] sm:$0xff] }
 0x213   : > { %1457 = vmatmul.mubr.f32.gmra.mrb[4].mxu1 %v4382_v52  ;;  %788 = vst [vmem:[#allocation4 + $0x71] sm:$0xff] %v4387_v54  ;;  %v727_v0 = vadd.f32 %v4344_v17, %v726_v59  ;;  %v4436_v33 = vld [vmem:[#allocation4 + $0x32] sm:$0xff] }
 0x214   : > { %1597 = vmatmul.mubr.f32.gmra.mrb[18].mxu0 %v4396_v63  ;;  %1461 = vmatprep.mubr.f32.mxu1 %v4359_v29  ;;  %v4404_v3 = vmax.f32 %v732_v58, 0.0  ;;  %v1337_v46 = vld [vmem:[%s4207_s16 + $0x350] sm:$0xff] }
 0x215   : > { %1601 = vmatprep.mubr.f32.mxu0 %v4389_v57  ;;  %v4407_v4 = vmax.f32 %v727_v0, 0.0  ;;  %v3085_v5 = vpop.f32.mrb[10].mxu0  ;;  %3339 = vmatpush3.bf16.msra.mxu0 %v3338_v56  ;;  %v4462_v55 = vld [vmem:[#allocation4 + $0x60] sm:$0xff]  ;;  %v3354_v59 = vpack.c.bf16 %v1338_v47, %v1337_v46 }
 0x216   : > { %791 = vst [vmem:[#allocation4 + $0xc1] sm:$0xff] %v4404_v3  ;;  %v742_v7 = vadd.f32 %v3085_v5, %v4344_v17  ;;  %v736_v8 = vpop.f32.mrb[11].mxu0  ;;  %3341 = vmatprep.subr.bf16.mxu0 %v3340_v60  ;;  %v4429_v25 = vld [vmem:[#allocation4 + $0x50] sm:$0xff]  ;;  %v3356_v60 = vpack.c.bf16 %v1356_v51, %v1355_v50  ;;  %v838_v5 = vld [vmem:[#allocation4 + $0xa1] sm:$0xff] }
 0x217   : > { %1462 = vmatmul.mubr.f32.gmra.mrb[6].mxu1 %v4389_v57  ;;  %790 = vst [vmem:[#allocation4 + $0xb1] sm:$0xff] %v4407_v4  ;;  %v737_v13 = vadd.f32 %v4344_v17, %v736_v8  ;;  %v4475_v0 = vld [vmem:[#allocation4 + $0x52] sm:$0xff]  ;;  %v4486_v10 = vld [vmem:[#allocation4 + $0x62] sm:$0xff]  ;;  %v1362_v46 = vld [vmem:[%s4207_s16 + $0x418] sm:$0xff] }
 0x218   : > { %1602 = vmatmul.mubr.f32.gmra.mrb[20].mxu0 %v4414_v12  ;;  %1466 = vmatprep.mubr.f32.mxu1 %v4357_v28  ;;  %v4424_v19 = vmax.f32 %v742_v7, 0.0  ;;  %v3360_v7 = vpack.c.bf16 %v1358_v2, %v1357_v1  ;;  %v1341_v8 = vld [vmem:[%s4207_s16 + $0x370] sm:$0xff]  ;;  %v1363_v51 = vld [vmem:[%s4207_s16 + $0x420] sm:$0xff]  ;;  %v1370_v1 = vld [vmem:[%s4207_s16 + $0x458] sm:$0xff] }
 0x219   : > { %1606 = vmatprep.mubr.f32.mxu0 %v4422_v18  ;;  %v4427_v20 = vmax.f32 %v737_v13, 0.0  ;;  %v3088_v21 = vpop.f32.mrb[12].mxu0  ;;  %3343 = vmatpush3.bf16.msra.mxu0 %v3342_v6  ;;  %v3358_v6 = vpack.c.bf16 %v1340_v62, %v1339_v61  ;;  %v4489_v11 = vld [vmem:[#allocation4 + $0x80] sm:$0xff]  ;;  %v1368_v62 = vld [vmem:[%s4207_s16 + $0x448] sm:$0xff] }
 0x21a   : > { %793 = vst [vmem:[#allocation4 + $0xe1] sm:$0xff] %v4424_v19  ;;  %v752_v26 = vadd.f32 %v3088_v21, %v4344_v17  ;;  %v746_v27 = vpop.f32.mrb[13].mxu0  ;;  %3345 = vmatprep.subr.bf16.mxu0 %v3344_v9  ;;  %v1342_v9 = vld [vmem:[%s4207_s16 + $0x378] sm:$0xff]  ;;  %v4492_v21 = vld [vmem:[#allocation4 + $0x72] sm:$0xff] }
 0x21b   : > { %1467 = vmatmul.mubr.f32.gmra.mrb[8].mxu1 %v4422_v18  ;;  %792 = vst [vmem:[#allocation4 + $0xd1] sm:$0xff] %v4427_v20  ;;  %v747_v34 = vadd.f32 %v4344_v17, %v746_v27  ;;  %v806_v13 = vld [vmem:[#allocation4 + $0xa0] sm:$0xff]  ;;  %v3362_v14 = vpack.c.bf16 %v1342_v9, %v1341_v8 }
 0x21c   : > { %1607 = vmatmul.mubr.f32.gmra.mrb[22].mxu0 %v4436_v33  ;;  %1471 = vmatprep.mubr.f32.mxu1 %v4371_v40  ;;  %v4444_v37 = vmax.f32 %v752_v26, 0.0  ;;  %v1366_v61 = vld [vmem:[%s4207_s16 + $0x438] sm:$0xff] }
 0x21d   : > { %1611 = vmatprep.mubr.f32.mxu0 %v4429_v25  ;;  %v4447_v39 = vmax.f32 %v747_v34, 0.0  ;;  %v3091_v41 = vpop.f32.mrb[14].mxu0  ;;  %3347 = vmatpush3.bf16.msra.mxu0 %v3346_v24  ;;  %v870_v24 = vld [vmem:[#allocation4 + $0xa2] sm:$0xff]  ;;  %v1374_v8 = vld [vmem:[%s4207_s16 + $0x478] sm:$0xff] }
 0x21e   : > { %795 = vst [vmem:[#allocation4 + $0x101] sm:$0xff] %v4444_v37  ;;  %v762_v43 = vadd.f32 %v3091_v41, %v4344_v17  ;;  %v756_v44 = vpop.f32.mrb[15].mxu0  ;;  %3349 = vmatprep.subr.bf16.mxu0 %v3348_v30  ;;  %v902_v15 = vld [vmem:[#allocation4 + $0xb0] sm:$0xff]  ;;  %v4497_v26 = vld [vmem:[#allocation4 + $0xc0] sm:$0xff] }
 0x21f   : > { %1472 = vmatmul.mubr.f32.gmra.mrb[10].mxu1 %v4429_v25  ;;  %794 = vst [vmem:[#allocation4 + $0xf1] sm:$0xff] %v4447_v39  ;;  %v757_v49 = vadd.f32 %v4344_v17, %v756_v44  ;;  %v4469_v17 = vld [vmem:[#allocation4 + $0x70] sm:$0xff]  ;;  %v4509_v31 = vld [vmem:[#allocation4 + $0xc2] sm:$0xff] }
 0x220   : > { %1612 = vmatmul.mubr.f32.gmra.mrb[24].mxu0 %v4454_v48  ;;  %1476 = vmatprep.mubr.f32.mxu1 %v4369_v38  ;;  %v4464_v56 = vmax.f32 %v762_v43, 0.0  ;;  %v4503_v30 = vld [vmem:[#allocation4 + $0xb2] sm:$0xff]  ;;  %v2130_v9 = vld [vmem:[%s4214_s14 + $0x38] sm:$0xff] }
 0x221   : > { %1616 = vmatprep.mubr.f32.mxu0 %v4462_v55  ;;  %v4467_v58 = vmax.f32 %v757_v49, 0.0  ;;  %3351 = vmatpush3.bf16.msra.mxu0 %v3350_v42  ;;  %v4513_v32 = vld [vmem:[#allocation4 + $0xe0] sm:$0xff] }
 0x222   : > { %797 = vst [vmem:[#allocation4 + $0x121] sm:$0xff] %v4464_v56  ;;  %3353 = vmatprep.subr.bf16.mxu0 %v3352_v45  ;;  %v4500_v27 = vld [vmem:[#allocation4 + $0xd0] sm:$0xff]  ;;  %v4525_v36 = vld [vmem:[#allocation4 + $0xe2] sm:$0xff] }
 0x223   : > { %1477 = vmatmul.mubr.f32.gmra.mrb[12].mxu1 %v4462_v55  ;;  %796 = vst [vmem:[#allocation4 + $0x111] sm:$0xff] %v4467_v58  ;;  %v4519_v35 = vld [vmem:[#allocation4 + $0xd2] sm:$0xff] }
 0x224   : > { %1617 = vmatmul.mubr.f32.gmra.mrb[26].mxu0 %v4475_v0  ;;  %1481 = vmatprep.mubr.f32.mxu1 %v4387_v54  ;;  %v1361_v45 = vld [vmem:[%s4207_s16 + $0x410] sm:$0xff] }
 0x225   : > { %1621 = vmatprep.mubr.f32.mxu0 %v4469_v17  ;;  %3355 = vmatpush3.bf16.msra.mxu0 %v3354_v59  ;;  %v4529_v41 = vld [vmem:[#allocation4 + $0x100] sm:$0xff]  ;;  %v3368_v49 = vpack.c.bf16 %v1362_v46, %v1361_v45  ;;  %v1364_v59 = vld [vmem:[%s4207_s16 + $0x428] sm:$0xff] }
 0x226   : > { %3357 = vmatprep.subr.bf16.mxu0 %v3356_v60  ;;  %v4516_v34 = vld [vmem:[#allocation4 + $0xf0] sm:$0xff]  ;;  %v4541_v44 = vld [vmem:[#allocation4 + $0x102] sm:$0xff] }
 0x227   : > { %1482 = vmatmul.mubr.f32.gmra.mrb[14].mxu1 %v4469_v17  ;;  %v4535_v43 = vld [vmem:[#allocation4 + $0xf2] sm:$0xff] }
 0x228   : > { %1622 = vmatmul.mubr.f32.gmra.mrb[28].mxu0 %v4486_v10  ;;  %1486 = vmatprep.mubr.f32.mxu1 %v838_v5  ;;  %v1365_v60 = vld [vmem:[%s4207_s16 + $0x430] sm:$0xff]  ;;  %v1371_v5 = vld [vmem:[%s4207_s16 + $0x460] sm:$0xff] }
 0x229   : > { %1626 = vmatprep.mubr.f32.mxu0 %v4489_v11  ;;  %3359 = vmatpush3.bf16.msra.mxu0 %v3358_v6  ;;  %v4546_v47 = vld [vmem:[#allocation4 + $0x120] sm:$0xff]  ;;  %v1372_v6 = vld [vmem:[%s4207_s16 + $0x468] sm:$0xff] }
 0x22a   : > { %3361 = vmatprep.subr.bf16.mxu0 %v3360_v7  ;;  %v4532_v42 = vld [vmem:[#allocation4 + $0x110] sm:$0xff] }
 0x22b   : > { %1487 = vmatmul.mubr.f32.gmra.mrb[16].mxu1 %v806_v13  ;;  %v4550_v50 = vld [vmem:[#allocation4 + $0x112] sm:$0xff] }
 0x22c   : > { %1627 = vmatmul.mubr.f32.gmra.mrb[30].mxu0 %v4492_v21  ;;  %1491 = vmatprep.mubr.f32.mxu1 %v4407_v4  ;;  %v1373_v7 = vld [vmem:[%s4207_s16 + $0x470] sm:$0xff] }
 0x22d   : > { %1631 = vmatprep.mubr.f32.mxu0 %v902_v15  ;;  %3363 = vmatpush3.bf16.msra.mxu0 %v3362_v14  ;;  %v2132_v13 = vld [vmem:[%s4214_s14 + $0x48] sm:$0xff] }
 0x22f   : > { %1492 = vmatmul.mubr.f32.gmra.mrb[18].mxu1 %v902_v15  ;;  %v2133_v15 = vld [vmem:[%s4214_s14 + $0x50] sm:$0xff] }
 0x230   : > { %1632 = vmatmul.mubr.f32.gmra.mrb[32].mxu0 %v870_v24  ;;  %1496 = vmatprep.mubr.f32.mxu1 %v4404_v3 }
 0x231   : > { %1636 = vmatprep.mubr.f32.mxu0 %v4497_v26 }
 0x233   : > { %1497 = vmatmul.mubr.f32.gmra.mrb[20].mxu1 %v4497_v26 }
 0x234   : > { %1637 = vmatmul.mubr.f32.gmra.mrb[34].mxu0 %v4503_v30  ;;  %1501 = vmatprep.mubr.f32.mxu1 %v4427_v20 }
 0x235   : > { %1641 = vmatprep.mubr.f32.mxu0 %v4500_v27 }
 0x237   : > { %1502 = vmatmul.mubr.f32.gmra.mrb[22].mxu1 %v4500_v27 }
 0x238   : > { %1642 = vmatmul.mubr.f32.gmra.mrb[36].mxu0 %v4509_v31  ;;  %1506 = vmatprep.mubr.f32.mxu1 %v4424_v19 }
 0x239   : > { %1646 = vmatprep.mubr.f32.mxu0 %v4513_v32 }
 0x23b   : > { %1507 = vmatmul.mubr.f32.gmra.mrb[24].mxu1 %v4513_v32 }
 0x23c   : > { %1647 = vmatmul.mubr.f32.gmra.mrb[38].mxu0 %v4519_v35  ;;  %1511 = vmatprep.mubr.f32.mxu1 %v4447_v39 }
 0x23d   : > { %1651 = vmatprep.mubr.f32.mxu0 %v4516_v34 }
 0x23f   : > { %1512 = vmatmul.mubr.f32.gmra.mrb[26].mxu1 %v4516_v34 }
 0x240   : > { %1652 = vmatmul.mubr.f32.gmra.mrb[40].mxu0 %v4525_v36  ;;  %1516 = vmatprep.mubr.f32.mxu1 %v4444_v37 }
 0x241   : > { %1656 = vmatprep.mubr.f32.mxu0 %v4529_v41 }
 0x243   : > { %1517 = vmatmul.mubr.f32.gmra.mrb[28].mxu1 %v4529_v41 }
 0x244   : > { %1657 = vmatmul.mubr.f32.gmra.mrb[42].mxu0 %v4535_v43  ;;  %1521 = vmatprep.mubr.f32.mxu1 %v4467_v58 }
 0x245   : > { %1661 = vmatprep.mubr.f32.mxu0 %v4532_v42 }
 0x247   : > { %1522 = vmatmul.mubr.f32.gmra.mrb[30].mxu1 %v4532_v42 }
 0x248   : > { %1662 = vmatmul.mubr.f32.gmra.mrb[44].mxu0 %v4541_v44  ;;  %1736 = vmatprep.mubr.f32.mxu1 %v4396_v63  ;;  %v3372_v63 = vpack.c.bf16 %v1364_v59, %v1363_v51 }
 0x249   : > { %1666 = vmatprep.mubr.f32.mxu0 %v4546_v47 }
 0x24b   : > { %1737 = vmatmul.mubr.f32.vlgmr.msra.gmra.mrb[32].mxu1 %v4350_v23  ;;  %v1367_v23 = vld [vmem:[%s4207_s16 + $0x440] sm:$0xff] }
 0x24c   : > { %1667 = vmatmul.mubr.f32.gmra.mrb[46].mxu0 %v4550_v50  ;;  %3367 = vmatpush3.bf16.msra.mxu1 %v4339_v16  ;;  %v3376_v16 = vpack.c.bf16 %v1366_v61, %v1365_v60 }
 0x24d   : > { %1741 = vmatprep.mubr.f32.mxu1 %v4414_v12  ;;  %1881 = vmatprep.mubr.f32.mxu0 %v4348_v22 }
 0x24e   : > { %3369 = vmatprep.subr.bf16.mxu1 %v3368_v49 }
 0x24f   : > { %1742 = vmatmul.mubr.f32.gmra.mrb[34].mxu1 %v4348_v22  ;;  %v3380_v22 = vpack.c.bf16 %v1368_v62, %v1367_v23 }
 0x250   : > { %1882 = vmatmul.mubr.f32.vlgmr.msra.gmra.mrb[48].mxu0 %v4382_v52  ;;  %1746 = vmatprep.mubr.f32.mxu1 %v4436_v33  ;;  %v1369_v52 = vld [vmem:[%s4207_s16 + $0x450] sm:$0xff] }
 0x251   : > { %1886 = vmatprep.mubr.f32.mxu0 %v4359_v29  ;;  %3371 = vmatpush3.bf16.msra.mxu1 %v3368_v49 }
 0x252   : > { %3373 = vmatprep.subr.bf16.mxu1 %v3372_v63 }
 0x253   : > { %1747 = vmatmul.mubr.f32.gmra.mrb[36].mxu1 %v4359_v29  ;;  %v2684_v29 = vpop.f32.mrb[0].mxu1 }
 0x254   : > { %1887 = vmatmul.mubr.f32.gmra.mrb[50].mxu0 %v4389_v57  ;;  %1751 = vmatprep.mubr.f32.mxu1 %v4454_v48  ;;  %v3384_v57 = vpack.c.bf16 %v1370_v1, %v1369_v52  ;;  %v2685_v2 = vpop.f32.mrb[1].mxu1 }
 0x255   : > { %1891 = vmatprep.mubr.f32.mxu0 %v4357_v28  ;;  %3375 = vmatpush3.bf16.msra.mxu1 %v3372_v63 }
 0x256   : > { %3377 = vmatprep.subr.bf16.mxu1 %v3376_v16 }
 0x257   : > { %1752 = vmatmul.mubr.f32.gmra.mrb[38].mxu1 %v4357_v28  ;;  %v4580_v28 = vadd.f32 %v2685_v2, %v2684_v29 }
 0x258   : > { %1892 = vmatmul.mubr.f32.gmra.mrb[52].mxu0 %v4422_v18  ;;  %1756 = vmatprep.mubr.f32.mxu1 %v4475_v0  ;;  %v3388_v18 = vpack.c.bf16 %v1372_v6, %v1371_v5 }
 0x259   : > { %1896 = vmatprep.mubr.f32.mxu0 %v4371_v40  ;;  %3379 = vmatpush3.bf16.msra.mxu1 %v3376_v16 }
 0x25a   : > { %3381 = vmatprep.subr.bf16.mxu1 %v3380_v22 }
 0x25b   : > { %1757 = vmatmul.mubr.f32.gmra.mrb[40].mxu1 %v4371_v40  ;;  %v3392_v40 = vpack.c.bf16 %v1374_v8, %v1373_v7 }
 0x25c   : > { %1897 = vmatmul.mubr.f32.gmra.mrb[54].mxu0 %v4429_v25  ;;  %1761 = vmatprep.mubr.f32.mxu1 %v4486_v10  ;;  %v965_v25 = vld [vmem:[#allocation4 + $0x82] sm:$0xff] }
 0x25d   : > { %1901 = vmatprep.mubr.f32.mxu0 %v4369_v38  ;;  %3383 = vmatpush3.bf16.msra.mxu1 %v3380_v22 }
 0x25e   : > { %3385 = vmatprep.subr.bf16.mxu1 %v3384_v57 }
 0x25f   : > { %1762 = vmatmul.mubr.f32.gmra.mrb[42].mxu1 %v4369_v38  ;;  %v1030_v38 = vld [vmem:[#allocation4 + $0x91] sm:$0xff] }
 0x260   : > { %1902 = vmatmul.mubr.f32.gmra.mrb[56].mxu0 %v4462_v55  ;;  %1766 = vmatprep.mubr.f32.mxu1 %v4492_v21  ;;  %v998_v55 = vld [vmem:[#allocation4 + $0x90] sm:$0xff] }
 0x261   : > { %1906 = vmatprep.mubr.f32.mxu0 %v4387_v54  ;;  %3387 = vmatpush3.bf16.msra.mxu1 %v3384_v57 }
 0x262   : > { %3389 = vmatprep.subr.bf16.mxu1 %v3388_v18 }
 0x263   : > { %1767 = vmatmul.mubr.f32.gmra.mrb[44].mxu1 %v4387_v54  ;;  %v1038_v54 = vld [vmem:[#allocation4 + $0x131] sm:$0xff] }
 0x264   : > { %1907 = vmatmul.mubr.f32.gmra.mrb[58].mxu0 %v4469_v17  ;;  %1771 = vmatprep.mubr.f32.mxu1 %v965_v25 }
 0x265   : > { %1911 = vmatprep.mubr.f32.mxu0 %v4384_v53  ;;  %3391 = vmatpush3.bf16.msra.mxu1 %v3388_v18 }
 0x266   : > { %3393 = vmatprep.subr.bf16.mxu1 %v3392_v40 }
 0x267   : > { %1772 = vmatmul.mubr.f32.gmra.mrb[46].mxu1 %v4384_v53  ;;  %v973_v53 = vld [vmem:[#allocation4 + $0x122] sm:$0xff] }
 0x268   : > { %1912 = vmatmul.mubr.f32.gmra.mrb[60].mxu0 %v4489_v11  ;;  %1776 = vmatprep.mubr.f32.mxu1 %v4503_v30  ;;  %v2131_v11 = vld [vmem:[%s4214_s14 + $0x40] sm:$0xff] }
 0x269   : > { %1916 = vmatprep.mubr.f32.mxu0 %v1030_v38  ;;  %3395 = vmatpush3.bf16.msra.mxu1 %v3392_v40  ;;  %v3412_v14 = vpack.c.bf16 %v2132_v13, %v2131_v11 }
 0x26b   : > { %1777 = vmatmul.mubr.f32.gmra.mrb[48].mxu1 %v4407_v4  ;;  %v1062_v4 = vld [vmem:[#allocation4 + $0x92] sm:$0xff] }
 0x26c   : > { %1917 = vmatmul.mubr.f32.gmra.mrb[62].mxu0 %v998_v55  ;;  %1781 = vmatprep.mubr.f32.mxu1 %v4509_v31 }
 0x26d   : > { %1921 = vmatprep.mubr.f32.mxu0 %v4404_v3 }
 0x26f   : > { %1782 = vmatmul.mubr.f32.gmra.mrb[50].mxu1 %v4404_v3  ;;  %v1006_v3 = vld [vmem:[#allocation4 + $0x130] sm:$0xff] }
 0x270   : > { %1922 = vmatmul.mubr.f32.gmra.mrb[64].mxu0 %v4497_v26  ;;  %1786 = vmatprep.mubr.f32.mxu1 %v4519_v35  ;;  %v2135_v26 = vld [vmem:[%s4214_s14 + $0x60] sm:$0xff] }
 0x271   : > { %1926 = vmatprep.mubr.f32.mxu0 %v4427_v20 }
 0x273   : > { %1787 = vmatmul.mubr.f32.gmra.mrb[52].mxu1 %v4427_v20  ;;  %v2124_v20 = vld [vmem:[%s4214_s14 + $0x8] sm:$0xff] }
 0x274   : > { %1927 = vmatmul.mubr.f32.gmra.mrb[66].mxu0 %v4500_v27  ;;  %1791 = vmatprep.mubr.f32.mxu1 %v4525_v36  ;;  %v2136_v27 = vld [vmem:[%s4214_s14 + $0x68] sm:$0xff] }
 0x275   : > { %1931 = vmatprep.mubr.f32.mxu0 %v4424_v19  ;;  %v3420_v30 = vpack.c.bf16 %v2136_v27, %v2135_v26 }
 0x277   : > { %1792 = vmatmul.mubr.f32.gmra.mrb[54].mxu1 %v4424_v19  ;;  %v2123_v19 = vld [vmem:[%s4214_s14] sm:$0xff] }
 0x278   : > { %1932 = vmatmul.mubr.f32.gmra.mrb[68].mxu0 %v4513_v32  ;;  %1796 = vmatprep.mubr.f32.mxu1 %v4535_v43  ;;  %v2138_v32 = vld [vmem:[%s4214_s14 + $0x78] sm:$0xff] }
 0x279   : > { %1936 = vmatprep.mubr.f32.mxu0 %v4447_v39 }
 0x27b   : > { %1797 = vmatmul.mubr.f32.gmra.mrb[56].mxu1 %v4447_v39  ;;  %v2126_v39 = vld [vmem:[%s4214_s14 + $0x18] sm:$0xff] }
 0x27c   : > { %1937 = vmatmul.mubr.f32.gmra.mrb[70].mxu0 %v4516_v34  ;;  %1801 = vmatprep.mubr.f32.mxu1 %v4541_v44 }
 0x27d   : > { %1941 = vmatprep.mubr.f32.mxu0 %v4444_v37 }
 0x27f   : > { %1802 = vmatmul.mubr.f32.gmra.mrb[58].mxu1 %v4444_v37  ;;  %v2125_v37 = vld [vmem:[%s4214_s14 + $0x10] sm:$0xff] }
 0x280   : > { %1942 = vmatmul.mubr.f32.gmra.mrb[72].mxu0 %v4529_v41  ;;  %1806 = vmatprep.mubr.f32.mxu1 %v4550_v50 }
 0x281   : > { %1946 = vmatprep.mubr.f32.mxu0 %v4467_v58 }
 0x283   : > { %1807 = vmatmul.mubr.f32.gmra.mrb[60].mxu1 %v4467_v58  ;;  %v2128_v58 = vld [vmem:[%s4214_s14 + $0x28] sm:$0xff] }
 0x284   : > { %1947 = vmatmul.mubr.f32.gmra.mrb[74].mxu0 %v4532_v42  ;;  %1811 = vmatprep.mubr.f32.mxu1 %v973_v53 }
 0x285   : > { %1951 = vmatprep.mubr.f32.mxu0 %v4464_v56 }
 0x287   : > { %1812 = vmatmul.mubr.f32.gmra.mrb[62].mxu1 %v4464_v56  ;;  %v2127_v56 = vld [vmem:[%s4214_s14 + $0x20] sm:$0xff] }
 0x288   : > { %1952 = vmatmul.mubr.f32.gmra.mrb[76].mxu0 %v4546_v47  ;;  %3124 = vmatprep.mubr.f32.mxu1 %v4414_v12  ;;  %v1070_v12 = vld [vmem:[#allocation4 + $0x132] sm:$0xff]  ;;  %v3404_v17 = vpack.c.bf16 %v2128_v58, %v2127_v56 }
 0x289   : > { %1956 = vmatprep.mubr.f32.mxu0 %v1038_v54 }
 0x28b   : > { %3125 = vmatmul.mubr.f32.vlgmr.msra.gmra.mrb[64].mxu1 %v4436_v33  ;;  %v3396_v33 = vpack.c.bf16 %v2124_v20, %v2123_v19 }
 0x28c   : > { %1957 = vmatmul.mubr.f32.gmra.mrb[78].mxu0 %v1006_v3  ;;  %3127 = vmatprep.mubr.f32.mxu1 %v4454_v48  ;;  %v3400_v48 = vpack.c.bf16 %v2126_v39, %v2125_v37 }
 0x28d   : > { %3397 = vmatprep.subr.bf16.mxu0 %v3396_v33  ;;  %3428 = vmatprep.subr.bf16.mxu1 %v3396_v33 }
 0x28e   : > { %3399 = vmatpush3.bf16.msra.mxu0 %v3396_v33  ;;  %3436 = vmatpush3.bf16.msra.mxu1 %v3396_v33 }
 0x28f   : > { %3128 = vmatmul.mubr.f32.gmra.mrb[66].mxu1 %v4475_v0  ;;  %3401 = vmatprep.subr.bf16.mxu0 %v3400_v48  ;;  %v2129_v0 = vld [vmem:[%s4214_s14 + $0x30] sm:$0xff] }
 0x290   : > { %3130 = vmatprep.mubr.f32.mxu1 %v4486_v10  ;;  %3429 = vmatprep.subr.bf16.mxu1 %v3400_v48  ;;  %v3408_v10 = vpack.c.bf16 %v2130_v9, %v2129_v0 }
 0x292   : > { %3403 = vmatpush3.bf16.msra.mxu0 %v3400_v48  ;;  %3437 = vmatpush3.bf16.msra.mxu1 %v3400_v48 }
 0x293   : > { %3131 = vmatmul.mubr.f32.gmra.mrb[68].mxu1 %v4492_v21  ;;  %3405 = vmatprep.subr.bf16.mxu0 %v3404_v17  ;;  %v2134_v21 = vld [vmem:[%s4214_s14 + $0x58] sm:$0xff] }
 0x294   : > { %3133 = vmatprep.mubr.f32.mxu1 %v965_v25  ;;  %3430 = vmatprep.subr.bf16.mxu1 %v3404_v17  ;;  %v3416_v24 = vpack.c.bf16 %v2134_v21, %v2133_v15 }
 0x296   : > { %3407 = vmatpush3.bf16.msra.mxu0 %v3404_v17  ;;  %3438 = vmatpush3.bf16.msra.mxu1 %v3404_v17 }
 0x297   : > { %3134 = vmatmul.mubr.f32.gmra.mrb[70].mxu1 %v1062_v4  ;;  %3409 = vmatprep.subr.bf16.mxu0 %v3408_v10 }
 0x298   : > { %3136 = vmatprep.mubr.f32.mxu1 %v4509_v31  ;;  %3431 = vmatprep.subr.bf16.mxu1 %v3408_v10  ;;  %v2137_v31 = vld [vmem:[%s4214_s14 + $0x70] sm:$0xff] }
 0x299   : > { %v3424_v34 = vpack.c.bf16 %v2138_v32, %v2137_v31 }
 0x29a   : > { %3411 = vmatpush3.bf16.msra.mxu0 %v3408_v10  ;;  %3439 = vmatpush3.bf16.msra.mxu1 %v3408_v10 }
 0x29b   : > { %3137 = vmatmul.mubr.f32.gmra.mrb[72].mxu1 %v4519_v35  ;;  %3413 = vmatprep.subr.bf16.mxu0 %v3412_v14  ;;  %v4655_v35 = vld [vmem:[%s408_s12] ss:$0 sm:$0xff] }
 0x29c   : > { %3139 = vmatprep.mubr.f32.mxu1 %v4525_v36  ;;  %3432 = vmatprep.subr.bf16.mxu1 %v3412_v14  ;;  %v1449_v45 = vadd.f32 %v4580_v28, %v4655_v35 }
 0x29e   : > { %3415 = vmatpush3.bf16.msra.mxu0 %v3412_v14  ;;  %3440 = vmatpush3.bf16.msra.mxu1 %v3412_v14 }
 0x29f   : > { %3140 = vmatmul.mubr.f32.gmra.mrb[74].mxu1 %v4535_v43  ;;  %3417 = vmatprep.subr.bf16.mxu0 %v3416_v24 }
 0x2a0   : > { %3142 = vmatprep.mubr.f32.mxu1 %v4541_v44  ;;  %3433 = vmatprep.subr.bf16.mxu1 %v3416_v24 }
 0x2a2   : > { %3419 = vmatpush3.bf16.msra.mxu0 %v3416_v24  ;;  %3441 = vmatpush3.bf16.msra.mxu1 %v3416_v24 }
 0x2a3   : > { %3143 = vmatmul.mubr.f32.gmra.mrb[76].mxu1 %v4550_v50  ;;  %3421 = vmatprep.subr.bf16.mxu0 %v3420_v30 }
 0x2a4   : > { %3145 = vmatprep.mubr.f32.mxu1 %v973_v53  ;;  %3434 = vmatprep.subr.bf16.mxu1 %v3420_v30 }
 0x2a6   : > { %3423 = vmatpush3.bf16.msra.mxu0 %v3420_v30  ;;  %3442 = vmatpush3.bf16.msra.mxu1 %v3420_v30 }
 0x2a7   : > { %3146 = vmatmul.mubr.f32.gmra.mrb[78].mxu1 %v1070_v12  ;;  %3425 = vmatprep.subr.bf16.mxu0 %v3424_v34 }
 0x2a8   : > { %3435 = vmatprep.subr.bf16.mxu1 %v3424_v34 }
 0x2aa   : > { %3427 = vmatpush3.bf16.msra.mxu0 %v3424_v34  ;;  %3443 = vmatpush3.bf16.msra.mxu1 %v3424_v34 }
 0x2e2   : > { %v2687_v36 = vpop.f32.mrb[2].mxu1 }
 0x2e3   : > { %v2764_v41 = vpop.f32.mrb[16].mxu0  ;;  %v2688_v42 = vpop.f32.mrb[3].mxu1 }
 0x2e4   : > { %v2689_v43 = vadd.f32 %v2688_v42, %v2687_v36  ;;  %v2765_v44 = vpop.f32.mrb[17].mxu0 }
 0x2e5   : > { %v2766_v46 = vadd.f32 %v2765_v44, %v2764_v41 }
 0x2e6   : > { %v2690_v47 = vpop.f32.mrb[4].mxu1  ;;  %v1454_v60 = vadd.f32 %v2689_v43, %v4655_v35 }
 0x2e7   : > { %v4659_v49 = vadd.f32 %v2766_v46, %v1449_v45  ;;  %v2767_v50 = vpop.f32.mrb[18].mxu0  ;;  %v2691_v51 = vpop.f32.mrb[5].mxu1 }
 0x2e8   : > { %v2692_v59 = vadd.f32 %v2691_v51, %v2690_v47  ;;  %v2768_v63 = vpop.f32.mrb[19].mxu0 }
 0x2e9   : > { %v2769_v61 = vadd.f32 %v2768_v63, %v2767_v50 }
 0x2ea   : > { %v2693_v16 = vpop.f32.mrb[6].mxu1  ;;  %v1459_v29 = vadd.f32 %v2692_v59, %v4655_v35 }
 0x2eb   : > { %v4662_v23 = vadd.f32 %v2769_v61, %v1454_v60  ;;  %v2770_v62 = vpop.f32.mrb[20].mxu0  ;;  %v2694_v22 = vpop.f32.mrb[7].mxu1 }
 0x2ec   : > { %v2695_v52 = vadd.f32 %v2694_v22, %v2693_v16  ;;  %v2771_v1 = vpop.f32.mrb[21].mxu0 }
 0x2ed   : > { %v2772_v57 = vadd.f32 %v2771_v1, %v2770_v62 }
 0x2ee   : > { %v2696_v2 = vpop.f32.mrb[8].mxu1  ;;  %v1464_v8 = vadd.f32 %v2695_v52, %v4655_v35 }
 0x2ef   : > { %v4665_v5 = vadd.f32 %v2772_v57, %v1459_v29  ;;  %v2773_v6 = vpop.f32.mrb[22].mxu0  ;;  %v2697_v28 = vpop.f32.mrb[9].mxu1 }
 0x2f0   : > { %v2698_v18 = vadd.f32 %v2697_v28, %v2696_v2  ;;  %v2774_v7 = vpop.f32.mrb[23].mxu0 }
 0x2f1   : > { %v2775_v40 = vadd.f32 %v2774_v7, %v2773_v6 }
 0x2f2   : > { %v2699_v25 = vpop.f32.mrb[10].mxu1  ;;  %v1469_v4 = vadd.f32 %v2698_v18, %v4655_v35 }
 0x2f3   : > { %v4668_v38 = vadd.f32 %v2775_v40, %v1464_v8  ;;  %v2776_v55 = vpop.f32.mrb[24].mxu0  ;;  %v2700_v53 = vpop.f32.mrb[11].mxu1 }
 0x2f4   : > { %v2701_v54 = vadd.f32 %v2700_v53, %v2699_v25  ;;  %v2777_v3 = vpop.f32.mrb[25].mxu0 }
 0x2f5   : > { %v2778_v12 = vadd.f32 %v2777_v3, %v2776_v55 }
 0x2f6   : > { %v2702_v19 = vpop.f32.mrb[12].mxu1  ;;  %v1474_v56 = vadd.f32 %v2701_v54, %v4655_v35 }
 0x2f7   : > { %v4671_v20 = vadd.f32 %v2778_v12, %v1469_v4  ;;  %v2779_v33 = vpop.f32.mrb[26].mxu0  ;;  %v2703_v37 = vpop.f32.mrb[13].mxu1 }
 0x2f8   : > { %v2704_v39 = vadd.f32 %v2703_v37, %v2702_v19  ;;  %v2780_v48 = vpop.f32.mrb[27].mxu0 }
 0x2f9   : > { %v2781_v58 = vadd.f32 %v2780_v48, %v2779_v33 }
 0x2fa   : > { %v2705_v17 = vpop.f32.mrb[14].mxu1  ;;  %v1479_v14 = vadd.f32 %v2704_v39, %v4655_v35 }
 0x2fb   : > { %v4674_v0 = vadd.f32 %v2781_v58, %v1474_v56  ;;  %v2782_v9 = vpop.f32.mrb[28].mxu0  ;;  %v2706_v10 = vpop.f32.mrb[15].mxu1 }
 0x2fc   : > { %v2707_v11 = vadd.f32 %v2706_v10, %v2705_v17  ;;  %v2783_v13 = vpop.f32.mrb[29].mxu0 }
 0x2fd   : > { %v2784_v15 = vadd.f32 %v2783_v13, %v2782_v9 }
 0x2fe   : > { %v2708_v21 = vpop.f32.mrb[16].mxu1  ;;  %v1484_v32 = vadd.f32 %v2707_v11, %v4655_v35 }
 0x2ff   : > { %v4677_v24 = vadd.f32 %v2784_v15, %v1479_v14  ;;  %v2785_v26 = vpop.f32.mrb[30].mxu0  ;;  %v2709_v27 = vpop.f32.mrb[17].mxu1 }
 0x300   : > { %v2710_v30 = vadd.f32 %v2709_v27, %v2708_v21  ;;  %v2786_v31 = vpop.f32.mrb[31].mxu0 }
 0x301   : > { %v2787_v34 = vadd.f32 %v2786_v31, %v2785_v26 }
 0x302   : > { %v2711_v36 = vpop.f32.mrb[18].mxu1  ;;  %v1489_v46 = vadd.f32 %v2710_v30, %v4655_v35 }
 0x303   : > { %v4680_v41 = vadd.f32 %v2787_v34, %v1484_v32  ;;  %v2788_v42 = vpop.f32.mrb[32].mxu0  ;;  %v2712_v43 = vpop.f32.mrb[19].mxu1 }
 0x304   : > { %v2713_v44 = vadd.f32 %v2712_v43, %v2711_v36  ;;  %v2789_v45 = vpop.f32.mrb[33].mxu0 }
 0x305   : > { %v2790_v47 = vadd.f32 %v2789_v45, %v2788_v42 }
 0x306   : > { %v2714_v50 = vpop.f32.mrb[20].mxu1  ;;  %v1494_v16 = vadd.f32 %v2713_v44, %v4655_v35 }
 0x307   : > { %v4683_v51 = vadd.f32 %v2790_v47, %v1489_v46  ;;  %v2791_v59 = vpop.f32.mrb[34].mxu0  ;;  %v2715_v63 = vpop.f32.mrb[21].mxu1 }
 0x308   : > { %v2716_v60 = vadd.f32 %v2715_v63, %v2714_v50  ;;  %v2792_v61 = vpop.f32.mrb[35].mxu0 }
 0x309   : > { %v2793_v62 = vadd.f32 %v2792_v61, %v2791_v59 }
 0x30a   : > { %v2717_v22 = vpop.f32.mrb[22].mxu1  ;;  %v1499_v6 = vadd.f32 %v2716_v60, %v4655_v35 }
 0x30b   : > { %v4686_v52 = vadd.f32 %v2793_v62, %v1494_v16  ;;  %v2794_v1 = vpop.f32.mrb[36].mxu0  ;;  %v2718_v29 = vpop.f32.mrb[23].mxu1 }
 0x30c   : > { %v2719_v57 = vadd.f32 %v2718_v29, %v2717_v22  ;;  %v2795_v2 = vpop.f32.mrb[37].mxu0 }
 0x30d   : > { %v2796_v28 = vadd.f32 %v2795_v2, %v2794_v1 }
 0x30e   : > { %v2720_v18 = vpop.f32.mrb[24].mxu1  ;;  %v1504_v53 = vadd.f32 %v2719_v57, %v4655_v35 }
 0x30f   : > { %v4689_v7 = vadd.f32 %v2796_v28, %v1499_v6  ;;  %v2797_v8 = vpop.f32.mrb[38].mxu0  ;;  %v2721_v40 = vpop.f32.mrb[25].mxu1 }
 0x310   : > { %v2722_v25 = vadd.f32 %v2721_v40, %v2720_v18  ;;  %v2798_v55 = vpop.f32.mrb[39].mxu0 }
 0x311   : > { %v2799_v54 = vadd.f32 %v2798_v55, %v2797_v8 }
 0x312   : > { %v2723_v3 = vpop.f32.mrb[26].mxu1  ;;  %v1509_v39 = vadd.f32 %v2722_v25, %v4655_v35 }
 0x313   : > { %v4692_v4 = vadd.f32 %v2799_v54, %v1504_v53  ;;  %v2800_v12 = vpop.f32.mrb[40].mxu0  ;;  %v2724_v19 = vpop.f32.mrb[27].mxu1 }
 0x314   : > { %v2725_v33 = vadd.f32 %v2724_v19, %v2723_v3  ;;  %v2801_v37 = vpop.f32.mrb[41].mxu0 }
 0x315   : > { %v2802_v48 = vadd.f32 %v2801_v37, %v2800_v12 }
 0x316   : > { %v2726_v56 = vpop.f32.mrb[28].mxu1  ;;  %v1514_v13 = vadd.f32 %v2725_v33, %v4655_v35 }
 0x317   : > { %v4695_v58 = vadd.f32 %v2802_v48, %v1509_v39  ;;  %v2803_v17 = vpop.f32.mrb[42].mxu0  ;;  %v2727_v9 = vpop.f32.mrb[29].mxu1 }
 0x318   : > { %v2728_v10 = vadd.f32 %v2727_v9, %v2726_v56  ;;  %v2804_v11 = vpop.f32.mrb[43].mxu0 }
 0x319   : > { %v2805_v14 = vadd.f32 %v2804_v11, %v2803_v17 }
 0x31a   : > { %v2729_v15 = vpop.f32.mrb[30].mxu1  ;;  %v1519_v32 = vadd.f32 %v2728_v10, %v4655_v35 }
 0x31b   : > { %v4698_v21 = vadd.f32 %v2805_v14, %v1514_v13  ;;  %v2806_v26 = vpop.f32.mrb[44].mxu0  ;;  %v2730_v27 = vpop.f32.mrb[31].mxu1 }
 0x31c   : > { %v2731_v30 = vadd.f32 %v2730_v27, %v2729_v15  ;;  %v2807_v31 = vpop.f32.mrb[45].mxu0 }
 0x31d   : > { %v2808_v34 = vadd.f32 %v2807_v31, %v2806_v26 }
 0x31e   : > { %v2844_v36 = vpop.f32.mrb[32].mxu1  ;;  %v1524_v47 = vadd.f32 %v2731_v30, %v4655_v35 }
 0x31f   : > { %v4701_v42 = vadd.f32 %v2808_v34, %v1519_v32  ;;  %v2809_v43 = vpop.f32.mrb[46].mxu0  ;;  %v2845_v44 = vpop.f32.mrb[33].mxu1 }
 0x320   : > { %v2810_v45 = vpop.f32.mrb[47].mxu0  ;;  %v2846_v46 = vadd.f32 %v2845_v44, %v2844_v36 }
 0x321   : > { %v2811_v50 = vadd.f32 %v2810_v45, %v2809_v43 }
 0x322   : > { %v1739_v59 = vadd.f32 %v2846_v46, %v4659_v49  ;;  %v2847_v63 = vpop.f32.mrb[34].mxu1 }
 0x323   : > { %v4705_v60 = vadd.f32 %v2811_v50, %v1524_v47  ;;  %v2924_v61 = vpop.f32.mrb[48].mxu0  ;;  %v2848_v16 = vpop.f32.mrb[35].mxu1 }
 0x324   : > { %v2849_v62 = vadd.f32 %v2848_v16, %v2847_v63  ;;  %v2925_v22 = vpop.f32.mrb[49].mxu0 }
 0x325   : > { %v2926_v1 = vadd.f32 %v2925_v22, %v2924_v61 }
 0x326   : > { %v1744_v29 = vadd.f32 %v2849_v62, %v4662_v23  ;;  %v2850_v57 = vpop.f32.mrb[36].mxu1 }
 0x327   : > { %v2927_v2 = vpop.f32.mrb[50].mxu0  ;;  %v2851_v6 = vpop.f32.mrb[37].mxu1  ;;  %v4708_v28 = vadd.f32 %v2926_v1, %v1739_v59 }
 0x328   : > { %v2852_v18 = vadd.f32 %v2851_v6, %v2850_v57  ;;  %v2928_v35 = vpop.f32.mrb[51].mxu0 }
 0x329   : > { %v2929_v8 = vadd.f32 %v2928_v35, %v2927_v2 }
 0x32a   : > { %v1749_v49 = vadd.f32 %v2852_v18, %v4665_v5  ;;  %v2853_v40 = vpop.f32.mrb[38].mxu1 }
 0x32b   : > { %v2930_v25 = vpop.f32.mrb[52].mxu0  ;;  %v2854_v55 = vpop.f32.mrb[39].mxu1  ;;  %v4711_v53 = vadd.f32 %v2929_v8, %v1744_v29 }
 0x32c   : > { %v2855_v54 = vadd.f32 %v2854_v55, %v2853_v40  ;;  %v2931_v3 = vpop.f32.mrb[53].mxu0 }
 0x32d   : > { %v2932_v12 = vadd.f32 %v2931_v3, %v2930_v25 }
 0x32e   : > { %v1754_v23 = vadd.f32 %v2855_v54, %v4668_v38  ;;  %v2856_v19 = vpop.f32.mrb[40].mxu1 }
 0x32f   : > { %v2933_v33 = vpop.f32.mrb[54].mxu0  ;;  %v2857_v37 = vpop.f32.mrb[41].mxu1  ;;  %v4714_v39 = vadd.f32 %v2932_v12, %v1749_v49 }
 0x330   : > { %v2858_v48 = vadd.f32 %v2857_v37, %v2856_v19  ;;  %v2934_v56 = vpop.f32.mrb[55].mxu0 }
 0x331   : > { %v2935_v17 = vadd.f32 %v2934_v56, %v2933_v33 }
 0x332   : > { %v1759_v5 = vadd.f32 %v2858_v48, %v4671_v20  ;;  %v2859_v9 = vpop.f32.mrb[42].mxu1 }
 0x333   : > { %v2936_v10 = vpop.f32.mrb[56].mxu0  ;;  %v2860_v11 = vpop.f32.mrb[43].mxu1  ;;  %v4717_v13 = vadd.f32 %v2935_v17, %v1754_v23 }
 0x334   : > { %v2861_v14 = vadd.f32 %v2860_v11, %v2859_v9  ;;  %v2937_v15 = vpop.f32.mrb[57].mxu0 }
 0x335   : > { %v2938_v26 = vadd.f32 %v2937_v15, %v2936_v10 }
 0x336   : > { %v1764_v38 = vadd.f32 %v2861_v14, %v4674_v0  ;;  %v2862_v27 = vpop.f32.mrb[44].mxu1 }
 0x337   : > { %v2939_v30 = vpop.f32.mrb[58].mxu0  ;;  %v2863_v31 = vpop.f32.mrb[45].mxu1  ;;  %v4720_v32 = vadd.f32 %v2938_v26, %v1759_v5 }
 0x338   : > { %v2864_v34 = vadd.f32 %v2863_v31, %v2862_v27  ;;  %v2940_v36 = vpop.f32.mrb[59].mxu0 }
 0x339   : > { %v2941_v43 = vadd.f32 %v2940_v36, %v2939_v30 }
 0x33a   : > { %v1769_v20 = vadd.f32 %v2864_v34, %v4677_v24  ;;  %v2865_v44 = vpop.f32.mrb[46].mxu1 }
 0x33b   : > { %v2942_v45 = vpop.f32.mrb[60].mxu0  ;;  %v2866_v46 = vpop.f32.mrb[47].mxu1  ;;  %v4723_v47 = vadd.f32 %v2941_v43, %v1764_v38 }
 0x33c   : > { %v2867_v50 = vadd.f32 %v2866_v46, %v2865_v44  ;;  %v2943_v59 = vpop.f32.mrb[61].mxu0 }
 0x33d   : > { %v2944_v63 = vadd.f32 %v2943_v59, %v2942_v45 }
 0x33e   : > { %v1774_v0 = vadd.f32 %v2867_v50, %v4680_v41  ;;  %v2868_v61 = vpop.f32.mrb[48].mxu1 }
 0x33f   : > { %v2945_v16 = vpop.f32.mrb[62].mxu0  ;;  %v2869_v62 = vpop.f32.mrb[49].mxu1  ;;  %v4726_v22 = vadd.f32 %v2944_v63, %v1769_v20 }
 0x340   : > { %v2870_v1 = vadd.f32 %v2869_v62, %v2868_v61  ;;  %v2946_v29 = vpop.f32.mrb[63].mxu0 }
 0x341   : > { %v2947_v57 = vadd.f32 %v2946_v29, %v2945_v16 }
 0x342   : > { %v1779_v24 = vadd.f32 %v2870_v1, %v4683_v51  ;;  %v2871_v2 = vpop.f32.mrb[50].mxu1 }
 0x343   : > { %v2948_v6 = vpop.f32.mrb[64].mxu0  ;;  %v2872_v18 = vpop.f32.mrb[51].mxu1  ;;  %v4729_v35 = vadd.f32 %v2947_v57, %v1774_v0 }
 0x344   : > { %v2873_v8 = vadd.f32 %v2872_v18, %v2871_v2  ;;  %v2949_v49 = vpop.f32.mrb[65].mxu0 }
 0x345   : > { %v2950_v40 = vadd.f32 %v2949_v49, %v2948_v6 }
 0x346   : > { %v1784_v41 = vadd.f32 %v2873_v8, %v4686_v52  ;;  %v2874_v25 = vpop.f32.mrb[52].mxu1 }
 0x347   : > { %v2951_v55 = vpop.f32.mrb[66].mxu0  ;;  %v2875_v54 = vpop.f32.mrb[53].mxu1  ;;  %v4732_v3 = vadd.f32 %v2950_v40, %v1779_v24 }
 0x348   : > { %v2876_v12 = vadd.f32 %v2875_v54, %v2874_v25  ;;  %v2952_v23 = vpop.f32.mrb[67].mxu0 }
 0x349   : > { %v2953_v19 = vadd.f32 %v2952_v23, %v2951_v55 }
 0x34a   : > { %v1789_v51 = vadd.f32 %v2876_v12, %v4689_v7  ;;  %v2877_v33 = vpop.f32.mrb[54].mxu1 }
 0x34b   : > { %v2954_v37 = vpop.f32.mrb[68].mxu0  ;;  %v2878_v48 = vpop.f32.mrb[55].mxu1  ;;  %v4735_v56 = vadd.f32 %v2953_v19, %v1784_v41 }
 0x34c   : > { %v2879_v17 = vadd.f32 %v2878_v48, %v2877_v33  ;;  %v2955_v5 = vpop.f32.mrb[69].mxu0 }
 0x34d   : > { %v2956_v9 = vadd.f32 %v2955_v5, %v2954_v37 }
 0x34e   : > { %v1794_v52 = vadd.f32 %v2879_v17, %v4692_v4  ;;  %v2880_v10 = vpop.f32.mrb[56].mxu1 }
 0x34f   : > { %v2957_v11 = vpop.f32.mrb[70].mxu0  ;;  %v2881_v14 = vpop.f32.mrb[57].mxu1  ;;  %v4738_v15 = vadd.f32 %v2956_v9, %v1789_v51 }
 0x350   : > { %v2882_v26 = vadd.f32 %v2881_v14, %v2880_v10  ;;  %v2958_v38 = vpop.f32.mrb[71].mxu0 }
 0x351   : > { %v2959_v27 = vadd.f32 %v2958_v38, %v2957_v11 }
 0x352   : > { %v1799_v7 = vadd.f32 %v2882_v26, %v4695_v58  ;;  %v2883_v30 = vpop.f32.mrb[58].mxu1 }
 0x353   : > { %v2960_v31 = vpop.f32.mrb[72].mxu0  ;;  %v2884_v34 = vpop.f32.mrb[59].mxu1  ;;  %v4741_v36 = vadd.f32 %v2959_v27, %v1794_v52 }
 0x354   : > { %v2885_v43 = vadd.f32 %v2884_v34, %v2883_v30  ;;  %v2961_v20 = vpop.f32.mrb[73].mxu0 }
 0x355   : > { %v2962_v44 = vadd.f32 %v2961_v20, %v2960_v31 }
 0x356   : > { %v1804_v4 = vadd.f32 %v2885_v43, %v4698_v21  ;;  %v2886_v45 = vpop.f32.mrb[60].mxu1 }
 0x357   : > { %v2963_v46 = vpop.f32.mrb[74].mxu0  ;;  %v2887_v50 = vpop.f32.mrb[61].mxu1  ;;  %v4744_v59 = vadd.f32 %v2962_v44, %v1799_v7 }
 0x358   : > { %v2888_v63 = vadd.f32 %v2887_v50, %v2886_v45  ;;  %v2964_v0 = vpop.f32.mrb[75].mxu0 }
 0x359   : > { %v2965_v61 = vadd.f32 %v2964_v0, %v2963_v46 }
 0x35a   : > { %v1809_v58 = vadd.f32 %v2888_v63, %v4701_v42  ;;  %v2889_v16 = vpop.f32.mrb[62].mxu1 }
 0x35b   : > { %v2966_v62 = vpop.f32.mrb[76].mxu0  ;;  %v2890_v1 = vpop.f32.mrb[63].mxu1  ;;  %v1949_v29 = vadd.f32 %v2965_v61, %v1804_v4  ;;  %v4763_v61 = vld [vmem:[%s425_s30] ss:$0 sm:$0xff] }
 0x35c   : > { %v2891_v57 = vadd.f32 %v2890_v1, %v2889_v16  ;;  %v2967_v24 = vpop.f32.mrb[77].mxu0 }
 0x35d   : > { %v2968_v2 = vadd.f32 %v2967_v24, %v2966_v62 }
 0x35e   : > { %v1814_v6 = vadd.f32 %v2891_v57, %v4705_v60  ;;  %v3126_v21 = vpop.f32.mrb[64].mxu1 }
 0x35f   : > { %v2969_v18 = vpop.f32.mrb[78].mxu0  ;;  %v2034_v8 = vadd.f32 %v3126_v21, %v4711_v53  ;;  %v2028_v49 = vpop.f32.mrb[65].mxu1  ;;  %v1954_v40 = vadd.f32 %v2968_v2, %v1809_v58  ;;  %v3534_v2 = vld [vmem:[#allocation2 + $0x8] sm:$0xff]  ;;  %v2339_v21 = vld [vmem:[#allocation3] sm:$0xff] }
 0x360   : > { %v2970_v41 = vpop.f32.mrb[79].mxu0  ;;  %v2029_v25 = vadd.f32 %v2028_v49, %v4708_v28  ;;  %v3535_v49 = vld [vmem:[#allocation2] sm:$0xff] }
 0x361   : > { %v2971_v55 = vadd.f32 %v2970_v41, %v2969_v18  ;;  %v2108_v12 = vmax.f32 %v2034_v8, 0.0 }
 0x362   : > { %v2107_v42 = vmax.f32 %v2029_v25, 0.0  ;;  %v3129_v54 = vpop.f32.mrb[66].mxu1 }
 0x363   : > { %v2044_v23 = vadd.f32 %v3129_v54, %v4717_v13  ;;  %v2038_v19 = vpop.f32.mrb[67].mxu1  ;;  %v1959_v51 = vadd.f32 %v2971_v55, %v1814_v6  ;;  %v2342_v54 = vld [vmem:[#allocation3 + $0x18] sm:$0xff] }
 0x364   : > { %v2039_v33 = vadd.f32 %v2038_v19, %v4714_v39  ;;  %3180 = vmatprep.mubr.f32.mxu0 %v2107_v42  ;;  %v3536_v19 = vld [vmem:[#allocation2 + $0x18] sm:$0xff] }
 0x365   : > { %3181 = vmatmul.mubr.f32.vlgmr.msra.gmra.mrb[80].mxu0 %v2108_v12  ;;  %v2110_v53 = vmax.f32 %v2044_v23, 0.0 }
 0x366   : > { %v2109_v60 = vmax.f32 %v2039_v33, 0.0  ;;  %v3132_v37 = vpop.f32.mrb[68].mxu1  ;;  %v2341_v33 = vld [vmem:[#allocation3 + $0x10] sm:$0xff] }
 0x367   : > { %v2054_v48 = vadd.f32 %v3132_v37, %v4723_v47  ;;  %v2048_v17 = vpop.f32.mrb[69].mxu1 }
 0x368   : > { %v2049_v28 = vadd.f32 %v2048_v17, %v4720_v32  ;;  %3183 = vmatprep.mubr.f32.mxu0 %v2109_v60 }
 0x369   : > { %3184 = vmatmul.mubr.f32.gmra.mrb[82].mxu0 %v2110_v53  ;;  %v2112_v52 = vmax.f32 %v2054_v48, 0.0  ;;  %v3537_v53 = vld [vmem:[#allocation2 + $0x10] sm:$0xff] }
 0x36a   : > { %v2111_v5 = vmax.f32 %v2049_v28, 0.0  ;;  %v3135_v9 = vpop.f32.mrb[70].mxu1 }
 0x36b   : > { %v2064_v13 = vadd.f32 %v3135_v9, %v4729_v35  ;;  %v2058_v10 = vpop.f32.mrb[71].mxu1 }
 0x36c   : > { %v2059_v39 = vadd.f32 %v2058_v10, %v4726_v22  ;;  %3186 = vmatprep.mubr.f32.mxu0 %v2111_v5 }
 0x36d   : > { %3187 = vmatmul.mubr.f32.gmra.mrb[84].mxu0 %v2112_v52  ;;  %v2114_v26 = vmax.f32 %v2064_v13, 0.0  ;;  %v2344_v52 = vld [vmem:[#allocation3 + $0x28] sm:$0xff] }
 0x36e   : > { %v2113_v11 = vmax.f32 %v2059_v39, 0.0  ;;  %v3138_v14 = vpop.f32.mrb[72].mxu1  ;;  %v3538_v39 = vld [vmem:[#allocation2 + $0x28] sm:$0xff] }
 0x36f   : > { %v2074_v47 = vadd.f32 %v3138_v14, %v4735_v56  ;;  %v2068_v38 = vpop.f32.mrb[73].mxu1  ;;  %v2343_v14 = vld [vmem:[#allocation3 + $0x20] sm:$0xff] }
 0x370   : > { %v2069_v32 = vadd.f32 %v2068_v38, %v4732_v3  ;;  %3189 = vmatprep.mubr.f32.mxu0 %v2113_v11  ;;  %v3539_v38 = vld [vmem:[#allocation2 + $0x20] sm:$0xff] }
 0x371   : > { %3190 = vmatmul.mubr.f32.gmra.mrb[86].mxu0 %v2114_v26  ;;  %v2116_v30 = vmax.f32 %v2074_v47, 0.0 }
 0x372   : > { %v2115_v27 = vmax.f32 %v2069_v32, 0.0  ;;  %v3141_v7 = vpop.f32.mrb[74].mxu1 }
 0x373   : > { %v2084_v35 = vadd.f32 %v3141_v7, %v4741_v36  ;;  %v2078_v31 = vpop.f32.mrb[75].mxu1 }
 0x374   : > { %v2079_v22 = vadd.f32 %v2078_v31, %v4738_v15  ;;  %3192 = vmatprep.mubr.f32.mxu1 %v2115_v27  ;;  %v2346_v31 = vld [vmem:[#allocation3 + $0x38] sm:$0xff] }
 0x375   : > { %3193 = vmatmul.mubr.f32.vlgmr.msra.gmra.mrb[80].mxu1 %v2116_v30  ;;  %v2118_v20 = vmax.f32 %v2084_v35, 0.0 }
 0x376   : > { %v2117_v34 = vmax.f32 %v2079_v22, 0.0  ;;  %v3144_v43 = vpop.f32.mrb[76].mxu1 }
 0x377   : > { %v2094_v44 = vadd.f32 %v3144_v43, %v1949_v29  ;;  %v2088_v56 = vpop.f32.mrb[77].mxu1  ;;  %v2340_v29 = vld [vmem:[#allocation3 + $0x8] sm:$0xff]  ;;  %v3540_v43 = vld [vmem:[#allocation2 + $0x38] sm:$0xff] }
 0x378   : > { %v2089_v3 = vadd.f32 %v2088_v56, %v4744_v59  ;;  %3195 = vmatprep.mubr.f32.mxu1 %v2117_v34 }
 0x379   : > { %3196 = vmatmul.mubr.f32.gmra.mrb[82].mxu1 %v2118_v20  ;;  %v2120_v46 = vmax.f32 %v2094_v44, 0.0  ;;  %v2345_v44 = vld [vmem:[#allocation3 + $0x30] sm:$0xff] }
 0x37a   : > { %v2119_v4 = vmax.f32 %v2089_v3, 0.0  ;;  %v3147_v45 = vpop.f32.mrb[78].mxu1 }
 0x37b   : > { %v2104_v50 = vadd.f32 %v3147_v45, %v1959_v51  ;;  %v2098_v36 = vpop.f32.mrb[79].mxu1 }
 0x37c   : > { %v2099_v63 = vadd.f32 %v2098_v36, %v1954_v40  ;;  %3198 = vmatprep.mubr.f32.mxu1 %v2119_v4  ;;  %v3541_v4 = vld [vmem:[#allocation2 + $0x30] sm:$0xff] }
 0x37d   : > { %3199 = vmatmul.mubr.f32.gmra.mrb[84].mxu1 %v2120_v46  ;;  %v2122_v0 = vmax.f32 %v2104_v50, 0.0 }
 0x37e   : > { %v2121_v15 = vmax.f32 %v2099_v63, 0.0 }
 0x380   : > { %3201 = vmatprep.mubr.f32.mxu1 %v2121_v15  ;;  %v2348_v15 = vld [vmem:[#allocation3 + $0x48] sm:$0xff] }
 0x381   : > { %3202 = vmatmul.mubr.f32.gmra.mrb[86].mxu1 %v2122_v0 }
 0x438   : > { %v3182_v58 = vpop.f32.mrb[80].mxu0 }
 0x439   : > { %v2218_v59 = vadd.f32 %v3182_v58, %v4763_v61  ;;  %v2212_v16 = vpop.f32.mrb[81].mxu0 }
 0x43a   : > { %v2213_v62 = vadd.f32 %v4763_v61, %v2212_v16 }
 0x43b   : > { %v2292_v1 = vmax.f32 %v2218_v59, 0.0  ;;  %v3542_v59 = vld [vmem:[#allocation2 + $0x48] sm:$0xff] }
 0x43c   : > { %v2291_v57 = vmax.f32 %v2213_v62, 0.0  ;;  %v3185_v24 = vpop.f32.mrb[82].mxu0  ;;  %v2347_v62 = vld [vmem:[#allocation3 + $0x40] sm:$0xff] }
 0x43d   : > { %v2308_v6 = vadd.f32 %v3534_v2, %v2292_v1  ;;  %v2228_v18 = vadd.f32 %v3185_v24, %v4763_v61  ;;  %v2222_v8 = vpop.f32.mrb[83].mxu0 }
 0x43e   : > { %v2307_v40 = vadd.f32 %v3535_v49, %v2291_v57  ;;  %v2223_v41 = vadd.f32 %v4763_v61, %v2222_v8  ;;  %v3543_v57 = vld [vmem:[#allocation2 + $0x40] sm:$0xff]  ;;  %v2350_v8 = vld [vmem:[#allocation3 + $0x58] sm:$0xff] }
 0x43f   : > { %2324 = vst [vmem:[#allocation2 + $0x8] sm:$0xff] %v2308_v6  ;;  %v2356_v25 = vadd.f32 %v2340_v29, %v2308_v6  ;;  %v2294_v55 = vmax.f32 %v2228_v18, 0.0 }
 0x440   : > { %2323 = vst [vmem:[#allocation2] sm:$0xff] %v2307_v40  ;;  %v2355_v42 = vadd.f32 %v2339_v21, %v2307_v40  ;;  %v2293_v12 = vmax.f32 %v2223_v41, 0.0  ;;  %v3188_v23 = vpop.f32.mrb[84].mxu0  ;;  %v3544_v41 = vld [vmem:[#allocation2 + $0x58] sm:$0xff] }
 0x441   : > { %2372 = vst [vmem:[#allocation3 + $0x8] sm:$0xff] %v2356_v25  ;;  %v2310_v51 = vadd.f32 %v3536_v19, %v2294_v55  ;;  %v2238_v60 = vadd.f32 %v3188_v23, %v4763_v61  ;;  %v2232_v37 = vpop.f32.mrb[85].mxu0  ;;  %v2349_v55 = vld [vmem:[#allocation3 + $0x50] sm:$0xff] }
 0x442   : > { %2371 = vst [vmem:[#allocation3] sm:$0xff] %v2355_v42  ;;  %v2309_v48 = vadd.f32 %v3537_v53, %v2293_v12  ;;  %v2233_v17 = vadd.f32 %v4763_v61, %v2232_v37  ;;  %v3545_v12 = vld [vmem:[#allocation2 + $0x50] sm:$0xff]  ;;  %v2352_v37 = vld [vmem:[#allocation3 + $0x68] sm:$0xff] }
 0x443   : > { %2326 = vst [vmem:[#allocation2 + $0x18] sm:$0xff] %v2310_v51  ;;  %v2358_v28 = vadd.f32 %v2342_v54, %v2310_v51  ;;  %v2296_v5 = vmax.f32 %v2238_v60, 0.0 }
 0x444   : > { %2325 = vst [vmem:[#allocation2 + $0x10] sm:$0xff] %v2309_v48  ;;  %v2357_v9 = vadd.f32 %v2341_v33, %v2309_v48  ;;  %v2295_v13 = vmax.f32 %v2233_v17, 0.0  ;;  %v3191_v10 = vpop.f32.mrb[86].mxu0  ;;  %v3546_v17 = vld [vmem:[#allocation2 + $0x68] sm:$0xff] }
 0x445   : > { %2374 = vst [vmem:[#allocation3 + $0x18] sm:$0xff] %v2358_v28  ;;  %v2312_v11 = vadd.f32 %v3538_v39, %v2296_v5  ;;  %v2248_v26 = vadd.f32 %v3191_v10, %v4763_v61  ;;  %v2242_v47 = vpop.f32.mrb[87].mxu0  ;;  %v2351_v5 = vld [vmem:[#allocation3 + $0x60] sm:$0xff] }
 0x446   : > { %2373 = vst [vmem:[#allocation3 + $0x10] sm:$0xff] %v2357_v9  ;;  %v2311_v32 = vadd.f32 %v3539_v38, %v2295_v13  ;;  %v2243_v27 = vadd.f32 %v4763_v61, %v2242_v47  ;;  %v3547_v13 = vld [vmem:[#allocation2 + $0x60] sm:$0xff]  ;;  %v2354_v47 = vld [vmem:[#allocation3 + $0x78] sm:$0xff] }
 0x447   : > { %2328 = vst [vmem:[#allocation2 + $0x28] sm:$0xff] %v2312_v11  ;;  %v2360_v7 = vadd.f32 %v2344_v52, %v2312_v11  ;;  %v2298_v30 = vmax.f32 %v2248_v26, 0.0 }
 0x448   : > { %2327 = vst [vmem:[#allocation2 + $0x20] sm:$0xff] %v2311_v32  ;;  %v2359_v35 = vadd.f32 %v2343_v14, %v2311_v32  ;;  %v2297_v22 = vmax.f32 %v2243_v27, 0.0  ;;  %v3194_v34 = vpop.f32.mrb[80].mxu1  ;;  %v3548_v32 = vld [vmem:[#allocation2 + $0x78] sm:$0xff] }
 0x449   : > { %2376 = vst [vmem:[#allocation3 + $0x28] sm:$0xff] %v2360_v7  ;;  %v2314_v20 = vadd.f32 %v3540_v43, %v2298_v30  ;;  %v2258_v56 = vadd.f32 %v3194_v34, %v4763_v61  ;;  %v2252_v3 = vpop.f32.mrb[81].mxu1  ;;  %v2353_v7 = vld [vmem:[#allocation3 + $0x70] sm:$0xff]  ;;  %v2392_v34 = vld [vmem:[#allocation3 + $0x8] sm:$0xff] (!%p2613_p4) }
 0x44a   : > { %2375 = vst [vmem:[#allocation3 + $0x20] sm:$0xff] %v2359_v35  ;;  %v2313_v45 = vadd.f32 %v3541_v4, %v2297_v22  ;;  %v2253_v46 = vadd.f32 %v4763_v61, %v2252_v3  ;;  %v3549_v30 = vld [vmem:[#allocation2 + $0x70] sm:$0xff]  ;;  %2408 = vst [vmem:[#allocation18 + $0x8] sm:$0xff] (!%p2613_p4), %v2392_v34 }
 0x44b   : > { %2330 = vst [vmem:[#allocation2 + $0x38] sm:$0xff] %v2314_v20  ;;  %v2362_v50 = vadd.f32 %v2346_v31, %v2314_v20  ;;  %v2300_v36 = vmax.f32 %v2258_v56, 0.0 }
 0x44c   : > { %2329 = vst [vmem:[#allocation2 + $0x30] sm:$0xff] %v2313_v45  ;;  %v2361_v63 = vadd.f32 %v2345_v44, %v2313_v45  ;;  %v2299_v0 = vmax.f32 %v2253_v46, 0.0  ;;  %v3197_v58 = vpop.f32.mrb[82].mxu1  ;;  %v2394_v20 = vld [vmem:[#allocation3 + $0x18] sm:$0xff] (!%p2613_p4) }
 0x44d   : > { %2378 = vst [vmem:[#allocation3 + $0x38] sm:$0xff] %v2362_v50  ;;  %v2316_v16 = vadd.f32 %v3542_v59, %v2300_v36  ;;  %v2268_v1 = vadd.f32 %v3197_v58, %v4763_v61  ;;  %v2262_v29 = vpop.f32.mrb[83].mxu1  ;;  %v2393_v43 = vld [vmem:[#allocation3 + $0x10] sm:$0xff] (!%p2613_p4)  ;;  %2410 = vst [vmem:[#allocation18 + $0x18] sm:$0xff] (!%p2613_p4), %v2394_v20 }
 0x44e   : > { %2377 = vst [vmem:[#allocation3 + $0x30] sm:$0xff] %v2361_v63  ;;  %v2315_v24 = vadd.f32 %v3543_v57, %v2299_v0  ;;  %v2263_v2 = vadd.f32 %v4763_v61, %v2262_v29  ;;  %2409 = vst [vmem:[#allocation18 + $0x10] sm:$0xff] (!%p2613_p4), %v2393_v43 }
 0x44f   : > { %2332 = vst [vmem:[#allocation2 + $0x48] sm:$0xff] %v2316_v16  ;;  %v2364_v6 = vadd.f32 %v2348_v15, %v2316_v16  ;;  %v2302_v21 = vmax.f32 %v2268_v1, 0.0 }
 0x450   : > { %2331 = vst [vmem:[#allocation2 + $0x40] sm:$0xff] %v2315_v24  ;;  %v2363_v18 = vadd.f32 %v2347_v62, %v2315_v24  ;;  %v2301_v49 = vmax.f32 %v2263_v2, 0.0  ;;  %v3200_v40 = vpop.f32.mrb[84].mxu1  ;;  %v2396_v56 = vld [vmem:[#allocation3 + $0x28] sm:$0xff] (!%p2613_p4) }
 0x451   : > { %2380 = vst [vmem:[#allocation3 + $0x48] sm:$0xff] %v2364_v6  ;;  %v2318_v25 = vadd.f32 %v3544_v41, %v2302_v21  ;;  %v2278_v42 = vadd.f32 %v3200_v40, %v4763_v61  ;;  %v2272_v54 = vpop.f32.mrb[85].mxu1  ;;  %v2395_v44 = vld [vmem:[#allocation3 + $0x20] sm:$0xff] (!%p2613_p4)  ;;  %2412 = vst [vmem:[#allocation18 + $0x28] sm:$0xff] (!%p2613_p4), %v2396_v56 }
 0x452   : > { %2379 = vst [vmem:[#allocation3 + $0x40] sm:$0xff] %v2363_v18  ;;  %v2317_v23 = vadd.f32 %v3545_v12, %v2301_v49  ;;  %v2273_v19 = vadd.f32 %v4763_v61, %v2272_v54  ;;  %2411 = vst [vmem:[#allocation18 + $0x20] sm:$0xff] (!%p2613_p4), %v2395_v44 }
 0x453   : > { %2334 = vst [vmem:[#allocation2 + $0x58] sm:$0xff] %v2318_v25  ;;  %v2366_v51 = vadd.f32 %v2350_v8, %v2318_v25  ;;  %v2304_v33 = vmax.f32 %v2278_v42, 0.0 }
 0x454   : > { %2333 = vst [vmem:[#allocation2 + $0x50] sm:$0xff] %v2317_v23  ;;  %v2365_v60 = vadd.f32 %v2349_v55, %v2317_v23  ;;  %v2303_v53 = vmax.f32 %v2273_v19, 0.0  ;;  %v3203_v48 = vpop.f32.mrb[86].mxu1  ;;  %v2398_v4 = vld [vmem:[#allocation3 + $0x38] sm:$0xff] (!%p2613_p4) }
 0x455   : > { %2382 = vst [vmem:[#allocation3 + $0x58] sm:$0xff] %v2366_v51  ;;  %v2320_v28 = vadd.f32 %v3546_v17, %v2304_v33  ;;  %v2288_v9 = vadd.f32 %v3203_v48, %v4763_v61  ;;  %v2282_v52 = vpop.f32.mrb[87].mxu1  ;;  %v2397_v3 = vld [vmem:[#allocation3 + $0x30] sm:$0xff] (!%p2613_p4)  ;;  %2414 = vst [vmem:[#allocation18 + $0x38] sm:$0xff] (!%p2613_p4), %v2398_v4 }
 0x456   : > { %2381 = vst [vmem:[#allocation3 + $0x50] sm:$0xff] %v2365_v60  ;;  %v2319_v10 = vadd.f32 %v3547_v13, %v2303_v53  ;;  %v2283_v39 = vadd.f32 %v4763_v61, %v2282_v52  ;;  %v2391_v61 = vld [vmem:[#allocation3] sm:$0xff] (!%p2613_p4)  ;;  %2413 = vst [vmem:[#allocation18 + $0x30] sm:$0xff] (!%p2613_p4), %v2397_v3 }
 0x457   : > { %2336 = vst [vmem:[#allocation2 + $0x68] sm:$0xff] %v2320_v28  ;;  %v2368_v11 = vadd.f32 %v2352_v37, %v2320_v28  ;;  %v2306_v14 = vmax.f32 %v2288_v9, 0.0  ;;  %2407 = vst [vmem:[#allocation18] sm:$0xff] (!%p2613_p4), %v2391_v61 }
 0x458   : > { %2335 = vst [vmem:[#allocation2 + $0x60] sm:$0xff] %v2319_v10  ;;  %v2367_v26 = vadd.f32 %v2351_v5, %v2319_v10  ;;  %v2305_v38 = vmax.f32 %v2283_v39, 0.0  ;;  %2390 = sbr.rel (%p2613_p4) target bundleno = 1127 (0x467), region = 84  ;;  %v2400_v46 = vld [vmem:[#allocation3 + $0x48] sm:$0xff] (!%p2613_p4) }
 0x459   : > { %2384 = vst [vmem:[#allocation3 + $0x68] sm:$0xff] %v2368_v11  ;;  %v2322_v27 = vadd.f32 %v3548_v32, %v2306_v14  ;;  %v2399_v45 = vld [vmem:[#allocation3 + $0x40] sm:$0xff] (!%p2613_p4)  ;;  %2416 = vst [vmem:[#allocation18 + $0x48] sm:$0xff] (!%p2613_p4), %v2400_v46 }
 0x45a   : > { %2383 = vst [vmem:[#allocation3 + $0x60] sm:$0xff] %v2367_v26  ;;  %v2321_v35 = vadd.f32 %v3549_v30, %v2305_v38  ;;  %2415 = vst [vmem:[#allocation18 + $0x40] sm:$0xff] (!%p2613_p4), %v2399_v45 }
 0x45b   : > { %2338 = vst [vmem:[#allocation2 + $0x78] sm:$0xff] %v2322_v27  ;;  %v2370_v31 = vadd.f32 %v2354_v47, %v2322_v27 }
 0x45c   : > { %2337 = vst [vmem:[#allocation2 + $0x70] sm:$0xff] %v2321_v35  ;;  %v2369_v22 = vadd.f32 %v2353_v7, %v2321_v35  ;;  %v2402_v36 = vld [vmem:[#allocation3 + $0x58] sm:$0xff] (!%p2613_p4) }
 0x45d   : > { %2386 = vst [vmem:[#allocation3 + $0x78] sm:$0xff] %v2370_v31  ;;  %v2401_v50 = vld [vmem:[#allocation3 + $0x50] sm:$0xff] (!%p2613_p4)  ;;  %2418 = vst [vmem:[#allocation18 + $0x58] sm:$0xff] (!%p2613_p4), %v2402_v36 }
 0x45e   : > { %2385 = vst [vmem:[#allocation3 + $0x70] sm:$0xff] %v2369_v22  ;;  %2417 = vst [vmem:[#allocation18 + $0x50] sm:$0xff] (!%p2613_p4), %v2401_v50 }
 0x460   : > { %v2404_v15 = vld [vmem:[#allocation3 + $0x68] sm:$0xff] }
 0x461   : > { %v2403_v63 = vld [vmem:[#allocation3 + $0x60] sm:$0xff]  ;;  %2420 = vst [vmem:[#allocation18 + $0x68] sm:$0xff] %v2404_v15 }
 0x462   : > { %2419 = vst [vmem:[#allocation18 + $0x60] sm:$0xff] %v2403_v63 }
 0x464   : > { %v2406_v58 = vld [vmem:[#allocation3 + $0x78] sm:$0xff] }
 0x465   : > { %v2405_v0 = vld [vmem:[#allocation3 + $0x70] sm:$0xff]  ;;  %2422 = vst [vmem:[#allocation18 + $0x78] sm:$0xff] %v2406_v58 }
 0x466   : > { %2421 = vst [vmem:[#allocation18 + $0x70] sm:$0xff] %v2405_v0 }
 0x467 PF: > { %p3493_p3 = scmp.eq.s32.totalorder %s4055_s20, 1  ;;  %s3846_s1 = smov [#allocation18]  }
 0x468   : > { %s2429_s17 = sshll.u32 %s3846_s1, 4  ;;  %s2430_s17 = int_to_ptr.vmem [resolvable:$true] %s2429_s17 }
 0x469   : > { %s3758_s10 = scalar_lea.vmem %s2430_s17, 2048  ;;  %p3765_p12 = scmp.lt.s32.totalorder %s2430_s17, %s2430_s17 }
 0x46a   : > { %p3759_p7 = scmp.ne.s32.totalorder %s2430_s17, %s3758_s10  ;;  %p3766_p5 = scmp.lt.s32.totalorder %s3758_s10, %s3758_s10 }
 0x46c   : > { %p3760_p8 = pnand %p3759_p7, %p3493_p3  ;;  %p3767_p6 = por %p3766_p5, %p3765_p12 }
 0x46e   : > { %p3761_p0 = pneg %p3760_p8 }
 0x470   : > { %p3768_p11 = pnand %p3767_p6, %p3761_p0 }
 0x472   : > { %3771 = shalt.err (!%p3768_p11)
}
 0x473   : > { %s3772_s29 = scalar_lea.hbm %s4825_s7, 2048 }
 0x474   : > { %p3773_p13 = scmp.ne.s32.totalorder %s4825_s7, %s3772_s29  ;;  %p3778_p9 = scmp.lt.u32.totalorder %s3772_s29, %s4825_s7 }
 0x476   : > { %p3774_p10 = pnand %p3773_p13, %p3493_p3 }
 0x478   : > { %p3775_p1 = pneg %p3774_p10 }
 0x47a   : > { %p3780_p2 = pnand %p3778_p9, %p3775_p1 }
 0x47c   : > { %3783 = shalt.err (!%p3780_p2)
}
 0x47d   : > { %s3847_s9 = smov 128   ;;  %s3848_s15 = smov 8  }
 0x47e   : > { %3464 = dma.vmem_to_hbm [thread:$0]  (%p3493_p3), %s2430_s17, 2048, %s4825_s7, [#allocation8], %s3847_s9, %s3847_s9, %s3848_s15  }
 0x47f   : > { %3817 = dma.done.wait (%p3493_p3), [#allocation8], 2048  }
 0x480   : > { %3819 = vsyncadd (%p3493_p3), [#allocation8], 4294965248 }
 0x481 PF: > { %p25_p4 = scmp.ge.s32.totalorder %s3910_s28, 4   ;;  %s4867_s24 = smov %s3826_s25 }
 0x482   : > { %s4868_s25 = smov %s3830_s26  ;;  %s4869_s26 = smov %s3919_s8 }
 0x483   : > { %s4870_s27 = smov %s3910_s28  ;;  %27 = sbr.rel (!%p25_p4) target bundleno = 12 (0xc), region = 159 }
 0x48a   :  { %2445 = vsyncpa [#allocation7], 1 }
 0x48b   :  { %2447 = vsyncpa [#allocation7 + $0x1], 1 }
 0x48c   :  { %2448 = vsyncpa [#allocation10], 1 }
 0x48d   :  { %2450 = vsyncpa [#allocation10 + $0x1], 1 }
 0x48e   :  { %2451 = vsyncpa [#allocation13], 1 }
 0x48f   :  { %2453 = vsyncpa [#allocation13 + $0x1], 1 }
 0x490   :  { %2454 = vsyncpa [#allocation16], 1 }
 0x491   :  { %2456 = vsyncpa [#allocation16 + $0x1], 1 }
 0x492   :  { %2457 = vsyncpa [#allocation8], 1 }
 0x493   :  { %2459 = vsyncpa [#allocation8 + $0x1], 1 }

</bundles_post_ra>
